<compile_context>
chip_gen: v6e
topology: v6e:2x2x1
jax: 0.10.0
libtpu: 0.0.40
codegen_flags: <defaults>
</compile_context>

<pallas_src>
import functools

import jax
import jax.numpy as jnp
from jax.experimental import pallas as pl
from jax.experimental.pallas import tpu as pltpu

H1 = 512
H2 = 256
OUT_PAD = 128  # lane-dense padded width of the final (logit) layer


def _round_up(x, m):
    return ((x + m - 1) // m) * m


def discriminator_kernel(x_ref, w1_ref, b1_ref, w2_ref, b2_ref, w3_ref, b3_ref,
                         o_ref):
    """One (TB, D_in) batch tile -> (TB, 128) lane-dense sigmoid slab."""
    x = x_ref[...]                                            # bf16 [TB, D_in]

    # Linear(D_in, 512) + LeakyReLU(0.2)  -- bf16 MXU, f32 accumulate
    h1 = jnp.dot(x, w1_ref[...], preferred_element_type=jnp.float32)
    h1 = h1 + b1_ref[...]                                     # f32 bias [1, 512]
    h1 = jnp.where(h1 > 0, h1, 0.2 * h1)                      # f32 VPU

    # Linear(512, 256) + LeakyReLU(0.2)
    h2 = jnp.dot(h1.astype(jnp.bfloat16), w2_ref[...],
                 preferred_element_type=jnp.float32)
    h2 = h2 + b2_ref[...]
    h2 = jnp.where(h2 > 0, h2, 0.2 * h2)

    # Linear(256, 1) + Sigmoid, computed on a zero-padded (256, 128) weight so
    # the store is a full-lane-width (TB, 128) slab (no masked vst.msk).
    h3 = jnp.dot(h2.astype(jnp.bfloat16), w3_ref[...],
                 preferred_element_type=jnp.float32)
    h3 = h3 + b3_ref[...]
    o_ref[...] = jax.nn.sigmoid(h3)                           # f32 [TB, 128]


@functools.partial(jax.jit, static_argnames=())
def discriminator_forward(img, params):
    """img: [B, C, H, W] float32.  Returns validity [B, 1] float32."""
    B = img.shape[0]
    # Row-major flatten (matches torch .view); bf16 to halve activation DMA.
    x_flat = img.reshape(B, -1).astype(jnp.bfloat16)
    d_in = x_flat.shape[1]
    w1, b1, w2, b2, w3, b3 = params

    # Batch tile: multiple of 8 sublanes, up to 256 MXU rows per step.
    TB = min(256, _round_up(B, 8))
    Bp = _round_up(B, TB)
    if Bp != B:
        x_flat = jnp.pad(x_flat, ((0, Bp - B), (0, 0)))

    grid = (Bp // TB,)

    flops = 2 * Bp * (d_in * H1 + H1 * H2 + H2 * OUT_PAD)
    bytes_accessed = (
        Bp * d_in * 2                       # x (bf16)
        + (d_in * H1 + H1 * H2 + H2 * OUT_PAD) * 2   # weights (bf16)
        + (H1 + H2 + OUT_PAD) * 4           # biases (f32)
        + Bp * OUT_PAD * 4                  # output slab (f32)
    )

    out = pl.pallas_call(
        discriminator_kernel,
        out_shape=jax.ShapeDtypeStruct((Bp, OUT_PAD), jnp.float32),
        grid=grid,
        in_specs=[
            pl.BlockSpec((TB, d_in), lambda i: (i, 0)),      # x: streams per tile
            pl.BlockSpec((d_in, H1), lambda i: (0, 0)),      # weights: resident
            pl.BlockSpec((1, H1), lambda i: (0, 0)),
            pl.BlockSpec((H1, H2), lambda i: (0, 0)),
            pl.BlockSpec((1, H2), lambda i: (0, 0)),
            pl.BlockSpec((H2, OUT_PAD), lambda i: (0, 0)),
            pl.BlockSpec((1, OUT_PAD), lambda i: (0, 0)),
        ],
        out_specs=pl.BlockSpec((TB, OUT_PAD), lambda i: (i, 0)),
        compiler_params=pltpu.CompilerParams(
            dimension_semantics=("parallel",),
        ),
        cost_estimate=pl.CostEstimate(
            flops=flops,
            transcendentals=Bp * OUT_PAD,
            bytes_accessed=bytes_accessed,
        ),
    )(x_flat, w1, b1, w2, b2, w3, b3)

    # Strip batch padding and the lane padding of the final layer.
    return out[:B, :1]


def init_params(key, d_in):
    """torch.nn.Linear-style init: U(-1/sqrt(fan_in), 1/sqrt(fan_in)).

    Weights stored as [in, out] bf16 (MXU inputs); biases f32.
    The final layer is zero-padded from out=1 to out=128 (lane-dense store);
    only column 0 is meaningful.
    """
    dims = [(d_in, H1), (H1, H2), (H2, 1)]
    params = []
    for li, (fan_in, fan_out) in enumerate(dims):
        key, kw, kb = jax.random.split(key, 3)
        bound = 1.0 / jnp.sqrt(float(fan_in))
        w = jax.random.uniform(kw, (fan_in, fan_out), jnp.float32, -bound, bound)
        b = jax.random.uniform(kb, (1, fan_out), jnp.float32, -bound, bound)
        if li == 2:  # pad final layer to lane width 128
            w = jnp.pad(w, ((0, 0), (0, OUT_PAD - fan_out)))
            b = jnp.pad(b, ((0, 0), (0, OUT_PAD - fan_out)))
        params += [w.astype(jnp.bfloat16), b.astype(jnp.float32)]
    return tuple(params)


def _reference_forward(img, params):
    """Pure-JAX reference using the same bf16 weights / bf16 activations."""
    B = img.shape[0]
    x = img.reshape(B, -1).astype(jnp.bfloat16)
    w1, b1, w2, b2, w3, b3 = params
    h1 = jnp.dot(x, w1, preferred_element_type=jnp.float32) + b1
    h1 = jnp.where(h1 > 0, h1, 0.2 * h1)
    h2 = jnp.dot(h1.astype(jnp.bfloat16), w2,
                 preferred_element_type=jnp.float32) + b2
    h2 = jnp.where(h2 > 0, h2, 0.2 * h2)
    h3 = jnp.dot(h2.astype(jnp.bfloat16), w3,
                 preferred_element_type=jnp.float32) + b3
    return jax.nn.sigmoid(h3)[:, :1]


if __name__ == "__main__":
    # Small but representative shapes: batch=2, channels=4, img_size=16
    B, C, H, W = 2, 4, 16, 16
    d_in = C * H * W                                  # 1024

    key = jax.random.PRNGKey(0)
    key, k_img = jax.random.split(key)
    img = jax.random.normal(k_img, (B, C, H, W), dtype=jnp.float32)

    params = init_params(key, d_in)

    validity = discriminator_forward(img, params)
    jax.block_until_ready(validity)

    assert validity.shape == (B, 1)
    assert bool(jnp.all((validity >= 0.0) & (validity <= 1.0)))

    ref = _reference_forward(img, params)
    assert bool(jnp.allclose(validity, ref, atol=1e-2, rtol=1e-2))

    print("KERNEL_OK")
</pallas_src>

<mosaic_0001>
module attributes {stable_mosaic.version = 11 : i64} {
  func.func @discriminator_kernel(%arg0: i32, %arg1: memref<8x1024xbf16, #tpu.memory_space<vmem>>, %arg2: memref<1024x512xbf16, #tpu.memory_space<vmem>>, %arg3: memref<1x512xf32, #tpu.memory_space<vmem>>, %arg4: memref<512x256xbf16, #tpu.memory_space<vmem>>, %arg5: memref<1x256xf32, #tpu.memory_space<vmem>>, %arg6: memref<256x128xbf16, #tpu.memory_space<vmem>>, %arg7: memref<1x128xf32, #tpu.memory_space<vmem>>, %arg8: memref<8x128xf32, #tpu.memory_space<vmem>>) attributes {dimension_semantics = [#tpu.dimension_semantics<parallel>], iteration_bounds = array<i64: 1>, scalar_prefetch = 0 : i64, scratch_operands = 0 : i64, tpu.core_type = #tpu.core_type<tc>, window_params = [{transform_indices = @transform_0, window_bounds = array<i64: 8, 1024>}, {pipeline_mode = #tpu.pipeline_mode<synchronous>, transform_indices = @transform_1, window_bounds = array<i64: 1024, 512>}, {pipeline_mode = #tpu.pipeline_mode<synchronous>, transform_indices = @transform_2, window_bounds = array<i64: 1, 512>}, {pipeline_mode = #tpu.pipeline_mode<synchronous>, transform_indices = @transform_3, window_bounds = array<i64: 512, 256>}, {pipeline_mode = #tpu.pipeline_mode<synchronous>, transform_indices = @transform_4, window_bounds = array<i64: 1, 256>}, {pipeline_mode = #tpu.pipeline_mode<synchronous>, transform_indices = @transform_5, window_bounds = array<i64: 256, 128>}, {pipeline_mode = #tpu.pipeline_mode<synchronous>, transform_indices = @transform_6, window_bounds = array<i64: 1, 128>}, {transform_indices = @transform_7, window_bounds = array<i64: 8, 128>}]} {
    %c0 = arith.constant 0 : index
    %c0_0 = arith.constant 0 : index
    %0 = vector.load %arg1[%c0, %c0_0] : memref<8x1024xbf16, #tpu.memory_space<vmem>>, vector<8x1024xbf16>
    %c0_1 = arith.constant 0 : index
    %c0_2 = arith.constant 0 : index
    %1 = vector.load %arg2[%c0_1, %c0_2] : memref<1024x512xbf16, #tpu.memory_space<vmem>>, vector<1024x512xbf16>
    %cst = arith.constant dense<0.000000e+00> : vector<8x512xf32>
    %2 = tpu.matmul %0, %1, %cst {dimension_numbers = #tpu.dot_dimension_numbers<[1], [0], [0], [1], [0, 0, 1, 1], [], []>} : vector<8x1024xbf16>, vector<1024x512xbf16>, vector<8x512xf32> -> vector<8x512xf32>
    %c0_3 = arith.constant 0 : index
    %c0_4 = arith.constant 0 : index
    %3 = vector.load %arg3[%c0_3, %c0_4] : memref<1x512xf32, #tpu.memory_space<vmem>>, vector<1x512xf32>
    %4 = vector.broadcast %3 : vector<1x512xf32> to vector<8x512xf32>
    %5 = arith.addf %2, %4 : vector<8x512xf32>
    %cst_5 = arith.constant 0.000000e+00 : f32
    %6 = vector.broadcast %cst_5 : f32 to vector<8x512xf32>
    %7 = arith.cmpf ogt, %5, %6 : vector<8x512xf32>
    %cst_6 = arith.constant 2.000000e-01 : f32
    %8 = vector.broadcast %cst_6 : f32 to vector<8x512xf32>
    %9 = arith.mulf %8, %5 : vector<8x512xf32>
    %10 = arith.select %7, %5, %9 : vector<8x512xi1>, vector<8x512xf32>
    %11 = arith.truncf %10 : vector<8x512xf32> to vector<8x512xbf16>
    %c0_7 = arith.constant 0 : index
    %c0_8 = arith.constant 0 : index
    %12 = vector.load %arg4[%c0_7, %c0_8] : memref<512x256xbf16, #tpu.memory_space<vmem>>, vector<512x256xbf16>
    %cst_9 = arith.constant dense<0.000000e+00> : vector<8x256xf32>
    %13 = tpu.matmul %11, %12, %cst_9 {dimension_numbers = #tpu.dot_dimension_numbers<[1], [0], [0], [1], [0, 0, 1, 1], [], []>} : vector<8x512xbf16>, vector<512x256xbf16>, vector<8x256xf32> -> vector<8x256xf32>
    %c0_10 = arith.constant 0 : index
    %c0_11 = arith.constant 0 : index
    %14 = vector.load %arg5[%c0_10, %c0_11] : memref<1x256xf32, #tpu.memory_space<vmem>>, vector<1x256xf32>
    %15 = vector.broadcast %14 : vector<1x256xf32> to vector<8x256xf32>
    %16 = arith.addf %13, %15 : vector<8x256xf32>
    %cst_12 = arith.constant 0.000000e+00 : f32
    %17 = vector.broadcast %cst_12 : f32 to vector<8x256xf32>
    %18 = arith.cmpf ogt, %16, %17 : vector<8x256xf32>
    %cst_13 = arith.constant 2.000000e-01 : f32
    %19 = vector.broadcast %cst_13 : f32 to vector<8x256xf32>
    %20 = arith.mulf %19, %16 : vector<8x256xf32>
    %21 = arith.select %18, %16, %20 : vector<8x256xi1>, vector<8x256xf32>
    %22 = arith.truncf %21 : vector<8x256xf32> to vector<8x256xbf16>
    %c0_14 = arith.constant 0 : index
    %c0_15 = arith.constant 0 : index
    %23 = vector.load %arg6[%c0_14, %c0_15] : memref<256x128xbf16, #tpu.memory_space<vmem>>, vector<256x128xbf16>
    %cst_16 = arith.constant dense<0.000000e+00> : vector<8x128xf32>
    %24 = tpu.matmul %22, %23, %cst_16 {dimension_numbers = #tpu.dot_dimension_numbers<[1], [0], [0], [1], [0, 0, 1, 1], [], []>} : vector<8x256xbf16>, vector<256x128xbf16>, vector<8x128xf32> -> vector<8x128xf32>
    %c0_17 = arith.constant 0 : index
    %c0_18 = arith.constant 0 : index
    %25 = vector.load %arg7[%c0_17, %c0_18] : memref<1x128xf32, #tpu.memory_space<vmem>>, vector<1x128xf32>
    %26 = vector.broadcast %25 : vector<1x128xf32> to vector<8x128xf32>
    %27 = arith.addf %24, %26 : vector<8x128xf32>
    %28 = arith.negf %27 : vector<8x128xf32>
    %29 = math.exp %28 : vector<8x128xf32>
    %cst_19 = arith.constant 1.000000e+00 : f32
    %30 = vector.broadcast %cst_19 : f32 to vector<8x128xf32>
    %31 = arith.addf %30, %29 : vector<8x128xf32>
    %32 = arith.divf %30, %31 : vector<8x128xf32>
    %c0_20 = arith.constant 0 : index
    %c0_21 = arith.constant 0 : index
    %33 = vector.load %arg8[%c0_20, %c0_21] : memref<8x128xf32, #tpu.memory_space<vmem>>, vector<8x128xf32>
    tpu.vector_store %arg8[%c0_20, %c0_21], %32 {strides = array<i32>} : memref<8x128xf32, #tpu.memory_space<vmem>>, vector<8x128xf32>,
    return
  }
  func.func @transform_0(%arg0: i32) -> (i32, i32) {
    %c0_i32 = arith.constant 0 : i32
    %c0_i32_0 = arith.constant 0 : i32
    return %arg0, %c0_i32 : i32, i32
  }
  func.func @transform_1(%arg0: i32) -> (i32, i32) {
    %c0_i32 = arith.constant 0 : i32
    %c0_i32_0 = arith.constant 0 : i32
    %c0_i32_1 = arith.constant 0 : i32
    return %c0_i32, %c0_i32_0 : i32, i32
  }
  func.func @transform_2(%arg0: i32) -> (i32, i32) {
    %c0_i32 = arith.constant 0 : i32
    %c0_i32_0 = arith.constant 0 : i32
    %c0_i32_1 = arith.constant 0 : i32
    return %c0_i32, %c0_i32_0 : i32, i32
  }
  func.func @transform_3(%arg0: i32) -> (i32, i32) {
    %c0_i32 = arith.constant 0 : i32
    %c0_i32_0 = arith.constant 0 : i32
    %c0_i32_1 = arith.constant 0 : i32
    return %c0_i32, %c0_i32_0 : i32, i32
  }
  func.func @transform_4(%arg0: i32) -> (i32, i32) {
    %c0_i32 = arith.constant 0 : i32
    %c0_i32_0 = arith.constant 0 : i32
    %c0_i32_1 = arith.constant 0 : i32
    return %c0_i32, %c0_i32_0 : i32, i32
  }
  func.func @transform_5(%arg0: i32) -> (i32, i32) {
    %c0_i32 = arith.constant 0 : i32
    %c0_i32_0 = arith.constant 0 : i32
    %c0_i32_1 = arith.constant 0 : i32
    return %c0_i32, %c0_i32_0 : i32, i32
  }
  func.func @transform_6(%arg0: i32) -> (i32, i32) {
    %c0_i32 = arith.constant 0 : i32
    %c0_i32_0 = arith.constant 0 : i32
    %c0_i32_1 = arith.constant 0 : i32
    return %c0_i32, %c0_i32_0 : i32, i32
  }
  func.func @transform_7(%arg0: i32) -> (i32, i32) {
    %c0_i32 = arith.constant 0 : i32
    %c0_i32_0 = arith.constant 0 : i32
    return %arg0, %c0_i32 : i32, i32
  }
}

</mosaic_0001>

<bundles_post_ra>
// kernel: discriminator_forward.1
= control target key start
LH: loop header
LB: loop body
LE: loop exit
PB: predicated region body
PF: predicated region fallthrough
CT: control target
= control target key end

     0   :  { %12 = vsyncpa [#allocation3], 0  ;;  %s3789_s0 = inlined_call_operand.vmem [shape: bf16[8,1024], index: 0, kind: input, shape index: {}]   ;;  %s3790_s1 = inlined_call_operand.hbm [shape: bf16[1024,512], index: 1, kind: input, shape index: {}]   ;;  %s3791_s2 = inlined_call_operand.vmem [shape: f32[1,512], index: 2, kind: input, shape index: {}]   ;;  %s3792_s3 = inlined_call_operand.hbm [shape: bf16[512,256], index: 3, kind: input, shape index: {}]   ;;  %s3793_s4 = inlined_call_operand.vmem [shape: f32[1,256], index: 4, kind: input, shape index: {}]   ;;  %s3794_s5 = inlined_call_operand.vmem [shape: bf16[256,128], index: 5, kind: input, shape index: {}]   ;;  %s3795_s6 = inlined_call_operand.vmem [shape: f32[1,128], index: 6, kind: input, shape index: {}]   ;;  %s3796_s7 = inlined_call_operand.vmem [shape: f32[8,128], index: 7, kind: output, shape index: {}]  }
   0x1   :  { %13 = vsyncpa [#allocation5], 0  ;;  %s3589_s24 = smov [#allocation2]  }
   0x2   :  { %s21_s25 = sshll.u32 %s3589_s24, 4  ;;  %s22_s25 = int_to_ptr.vmem [resolvable:$true] %s21_s25 }
   0x3   :  { %s3553_s26 = scalar_lea.vmem %s22_s25, 32768  ;;  %p3558_p1 = scmp.lt.s32.totalorder %s22_s25, %s22_s25 }
   0x4   :  { %p3554_p0 = scmp.ne.s32.totalorder %s22_s25, %s3553_s26  ;;  %p3559_p2 = scmp.lt.s32.totalorder %s3553_s26, %s3553_s26 }
   0x6   :  { %p3560_p3 = por %p3559_p2, %p3558_p1 }
   0x8   :  { %p3561_p4 = pnand %p3560_p3, %p3554_p0 }
   0xa   :  { %3564 = shalt.err (!%p3561_p4)
}
   0xb   :  { %s3590_s27 = smov 256   ;;  %s3591_s28 = smov 16  }
   0xc   :  { %27 = dma.hbm_to_vmem [thread:$0]  %s3790_s1, 32768, %s22_s25, [#allocation3], %s3590_s27, %s3590_s27, %s3591_s28  }
   0xd   :  { %s3592_s8 = smov [#allocation4]  }
   0xe   :  { %s35_s9 = sshll.u32 %s3592_s8, 4  ;;  %s36_s9 = int_to_ptr.vmem [resolvable:$true] %s35_s9 }
   0xf   :  { %s3573_s10 = scalar_lea.vmem %s36_s9, 8192  ;;  %p3578_p6 = scmp.lt.s32.totalorder %s36_s9, %s36_s9 }
  0x10   :  { %p3574_p5 = scmp.ne.s32.totalorder %s36_s9, %s3573_s10  ;;  %p3579_p7 = scmp.lt.s32.totalorder %s3573_s10, %s3573_s10 }
  0x12   :  { %p3580_p8 = por %p3579_p7, %p3578_p6 }
  0x14   :  { %p3581_p9 = pnand %p3580_p8, %p3574_p5 }
  0x16   :  { %3584 = shalt.err (!%p3581_p9)
}
  0x17   :  { %s3593_s11 = smov 128   ;;  %s3594_s12 = smov 8  }
  0x18   :  { %41 = dma.hbm_to_vmem [thread:$0]  %s3792_s3, 8192, %s36_s9, [#allocation5], %s3593_s11, %s3593_s11, %s3594_s12  }
  0x19   :  { %3585 = dma.done.wait [#allocation3], 32768  }
  0x1a   :  { %3586 = vsyncadd [#allocation3], 4294934528 }
  0x1b   :  { %3587 = dma.done.wait [#allocation5], 8192  }
  0x1c   :  { %3588 = vsyncadd [#allocation5], 4294959104  ;;  %v3037_v0 = vld [vmem:[#allocation2 + $0xe4] ss:$16 sps:$4 sm:$0xff]   ;;  %v3041_v2 = vld [vmem:[#allocation2 + $0xe0] ss:$16 sps:$4 sm:$0xff]  }
  0x1d   :  { %v3039_v1 = vld [vmem:[#allocation2 + $0x2e4] ss:$16 sps:$4 sm:$0xff]   ;;  %1645 = vmatprep.subr.bf16.mxu0 %v3037_v0  ;;  %v3042_v3 = vld [vmem:[#allocation2 + $0x2e0] ss:$16 sps:$4 sm:$0xff]   ;;  %v56_v48 = vld [vmem:[%s3789_s0 + $0x8] sm:$0xff] }
  0x1e   :  { %1686 = vmatprep.subr.bf16.mxu1 %v3039_v1  ;;  %v3043_v4 = vld [vmem:[#allocation2 + $0xc4] ss:$16 sps:$4 sm:$0xff]   ;;  %1646 = vmatpush1.bf16.msra.mxu0 %v3041_v2  ;;  %v3047_v6 = vld [vmem:[#allocation2 + $0xc0] ss:$16 sps:$4 sm:$0xff]   ;;  %v3649_v51 = vcombine.high %v56_v48, %v56_v48 }
  0x1f   :  { %1687 = vmatpush1.bf16.msra.mxu1 %v3042_v3  ;;  %v3045_v5 = vld [vmem:[#allocation2 + $0x2c4] ss:$16 sps:$4 sm:$0xff]   ;;  %1647 = vmatprep.subr.bf16.mxu0 %v3043_v4  ;;  %v3048_v7 = vld [vmem:[#allocation2 + $0x2c0] ss:$16 sps:$4 sm:$0xff]  }
  0x20   :  { %1688 = vmatprep.subr.bf16.mxu1 %v3045_v5  ;;  %v3049_v8 = vld [vmem:[#allocation2 + $0xa4] ss:$16 sps:$4 sm:$0xff]   ;;  %v3053_v10 = vld [vmem:[#allocation2 + $0xa0] ss:$16 sps:$4 sm:$0xff]   ;;  %1718 = vmatprep.mubr.bf16.mxu1 %v3649_v51 }
  0x21   :  { %v3051_v9 = vld [vmem:[#allocation2 + $0x2a4] ss:$16 sps:$4 sm:$0xff]   ;;  %v3054_v11 = vld [vmem:[#allocation2 + $0x2a0] ss:$16 sps:$4 sm:$0xff]  }
  0x22   :  { %1648 = vmatpush1.bf16.msra.mxu0 %v3047_v6  ;;  %v3055_v12 = vld [vmem:[#allocation2 + $0x84] ss:$16 sps:$4 sm:$0xff]   ;;  %v3059_v14 = vld [vmem:[#allocation2 + $0x80] ss:$16 sps:$4 sm:$0xff]  }
  0x23   :  { %1689 = vmatpush1.bf16.msra.mxu1 %v3048_v7  ;;  %1649 = vmatprep.subr.bf16.mxu0 %v3049_v8  ;;  %v3057_v13 = vld [vmem:[#allocation2 + $0x284] ss:$16 sps:$4 sm:$0xff]   ;;  %v3060_v15 = vld [vmem:[#allocation2 + $0x280] ss:$16 sps:$4 sm:$0xff]   ;;  %v3655_v7 = vcombine.low %v56_v48, %v56_v48 }
  0x24   :  { %1690 = vmatprep.subr.bf16.mxu1 %v3051_v9  ;;  %v3061_v16 = vld [vmem:[#allocation2 + $0x64] ss:$16 sps:$4 sm:$0xff]   ;;  %v3065_v18 = vld [vmem:[#allocation2 + $0x60] ss:$16 sps:$4 sm:$0xff]  }
  0x25   :  { %v3063_v17 = vld [vmem:[#allocation2 + $0x264] ss:$16 sps:$4 sm:$0xff]   ;;  %v3066_v19 = vld [vmem:[#allocation2 + $0x260] ss:$16 sps:$4 sm:$0xff]  }
  0x26   :  { %1650 = vmatpush1.bf16.msra.mxu0 %v3053_v10  ;;  %v3067_v20 = vld [vmem:[#allocation2 + $0x44] ss:$16 sps:$4 sm:$0xff]   ;;  %v3071_v22 = vld [vmem:[#allocation2 + $0x40] ss:$16 sps:$4 sm:$0xff]  }
  0x27   :  { %1691 = vmatpush1.bf16.msra.mxu1 %v3054_v11  ;;  %1651 = vmatprep.subr.bf16.mxu0 %v3055_v12  ;;  %v3069_v21 = vld [vmem:[#allocation2 + $0x244] ss:$16 sps:$4 sm:$0xff]   ;;  %v3072_v23 = vld [vmem:[#allocation2 + $0x240] ss:$16 sps:$4 sm:$0xff]  }
  0x28   :  { %1692 = vmatprep.subr.bf16.mxu1 %v3057_v13  ;;  %v3073_v24 = vld [vmem:[#allocation2 + $0x24] ss:$16 sps:$4 sm:$0xff]   ;;  %v3077_v26 = vld [vmem:[#allocation2 + $0x20] ss:$16 sps:$4 sm:$0xff]  }
  0x29   :  { %v3075_v25 = vld [vmem:[#allocation2 + $0x224] ss:$16 sps:$4 sm:$0xff]   ;;  %v3078_v27 = vld [vmem:[#allocation2 + $0x220] ss:$16 sps:$4 sm:$0xff]  }
  0x2a   :  { %1652 = vmatpush1.bf16.msra.mxu0 %v3059_v14  ;;  %v3079_v28 = vld [vmem:[#allocation2 + $0x4] ss:$16 sps:$4 sm:$0xff]   ;;  %v3083_v30 = vld [vmem:[#allocation2] ss:$16 sps:$4 sm:$0xff]  }
  0x2b   :  { %1693 = vmatpush1.bf16.msra.mxu1 %v3060_v15  ;;  %1653 = vmatprep.subr.bf16.mxu0 %v3061_v16  ;;  %v3081_v29 = vld [vmem:[#allocation2 + $0x204] ss:$16 sps:$4 sm:$0xff]   ;;  %v3084_v31 = vld [vmem:[#allocation2 + $0x200] ss:$16 sps:$4 sm:$0xff]  }
  0x2c   :  { %1694 = vmatprep.subr.bf16.mxu1 %v3063_v17  ;;  %v3085_v32 = vld [vmem:[#allocation2 + $0x1e4] ss:$16 sps:$4 sm:$0xff]   ;;  %v3089_v34 = vld [vmem:[#allocation2 + $0x1e0] ss:$16 sps:$4 sm:$0xff]  }
  0x2d   :  { %v3087_v33 = vld [vmem:[#allocation2 + $0x3e4] ss:$16 sps:$4 sm:$0xff]   ;;  %v3090_v35 = vld [vmem:[#allocation2 + $0x3e0] ss:$16 sps:$4 sm:$0xff]  }
  0x2e   :  { %1654 = vmatpush1.bf16.msra.mxu0 %v3065_v18  ;;  %v3091_v36 = vld [vmem:[#allocation2 + $0x1c4] ss:$16 sps:$4 sm:$0xff]   ;;  %v3095_v38 = vld [vmem:[#allocation2 + $0x1c0] ss:$16 sps:$4 sm:$0xff]  }
  0x2f   :  { %1695 = vmatpush1.bf16.msra.mxu1 %v3066_v19  ;;  %1655 = vmatprep.subr.bf16.mxu0 %v3067_v20  ;;  %v3093_v37 = vld [vmem:[#allocation2 + $0x3c4] ss:$16 sps:$4 sm:$0xff]   ;;  %v3096_v39 = vld [vmem:[#allocation2 + $0x3c0] ss:$16 sps:$4 sm:$0xff]  }
  0x30   :  { %1696 = vmatprep.subr.bf16.mxu1 %v3069_v21  ;;  %v3097_v40 = vld [vmem:[#allocation2 + $0x1a4] ss:$16 sps:$4 sm:$0xff]   ;;  %v3101_v42 = vld [vmem:[#allocation2 + $0x1a0] ss:$16 sps:$4 sm:$0xff]  }
  0x31   :  { %v3099_v41 = vld [vmem:[#allocation2 + $0x3a4] ss:$16 sps:$4 sm:$0xff]   ;;  %v3102_v43 = vld [vmem:[#allocation2 + $0x3a0] ss:$16 sps:$4 sm:$0xff]  }
  0x32   :  { %1656 = vmatpush1.bf16.msra.mxu0 %v3071_v22  ;;  %v3103_v44 = vld [vmem:[#allocation2 + $0x184] ss:$16 sps:$4 sm:$0xff]   ;;  %v3107_v49 = vld [vmem:[#allocation2 + $0x180] ss:$16 sps:$4 sm:$0xff]  }
  0x33   :  { %1697 = vmatpush1.bf16.msra.mxu1 %v3072_v23  ;;  %1657 = vmatprep.subr.bf16.mxu0 %v3073_v24  ;;  %v3105_v45 = vld [vmem:[#allocation2 + $0x384] ss:$16 sps:$4 sm:$0xff]   ;;  %v3108_v50 = vld [vmem:[#allocation2 + $0x380] ss:$16 sps:$4 sm:$0xff]  }
  0x34   :  { %1698 = vmatprep.subr.bf16.mxu1 %v3075_v25  ;;  %v55_v46 = vld [vmem:[%s3789_s0] sm:$0xff] }
  0x35   :  { %v3644_v47 = vcombine.high %v55_v46, %v55_v46  ;;  %v3109_v52 = vld [vmem:[#allocation2 + $0x164] ss:$16 sps:$4 sm:$0xff]   ;;  %v3113_v54 = vld [vmem:[#allocation2 + $0x160] ss:$16 sps:$4 sm:$0xff]   ;;  %v3653_v6 = vcombine.low %v55_v46, %v55_v46 }
  0x36   :  { %1658 = vmatpush1.bf16.msra.mxu0 %v3077_v26  ;;  %v3111_v53 = vld [vmem:[#allocation2 + $0x364] ss:$16 sps:$4 sm:$0xff]   ;;  %v3114_v55 = vld [vmem:[#allocation2 + $0x360] ss:$16 sps:$4 sm:$0xff]  }
  0x37   :  { %1699 = vmatpush1.bf16.msra.mxu1 %v3078_v27  ;;  %1659 = vmatprep.subr.bf16.mxu0 %v3079_v28  ;;  %v3115_v56 = vld [vmem:[#allocation2 + $0x144] ss:$16 sps:$4 sm:$0xff]   ;;  %v3119_v58 = vld [vmem:[#allocation2 + $0x140] ss:$16 sps:$4 sm:$0xff]  }
  0x38   :  { %1700 = vmatprep.subr.bf16.mxu1 %v3081_v29  ;;  %1677 = vmatprep.mubr.bf16.mxu0 %v3644_v47  ;;  %v3117_v57 = vld [vmem:[#allocation2 + $0x344] ss:$16 sps:$4 sm:$0xff]   ;;  %v3120_v59 = vld [vmem:[#allocation2 + $0x340] ss:$16 sps:$4 sm:$0xff]  }
  0x39   :  { %v3121_v60 = vld [vmem:[#allocation2 + $0x124] ss:$16 sps:$4 sm:$0xff]   ;;  %v3125_v62 = vld [vmem:[#allocation2 + $0x120] ss:$16 sps:$4 sm:$0xff]  }
  0x3a   :  { %1660 = vmatpush1.bf16.msra.mxu0 %v3083_v30  ;;  %v3123_v61 = vld [vmem:[#allocation2 + $0x324] ss:$16 sps:$4 sm:$0xff]   ;;  %v3126_v63 = vld [vmem:[#allocation2 + $0x320] ss:$16 sps:$4 sm:$0xff]  }
  0x3b   :  { %1701 = vmatpush1.bf16.msra.mxu1 %v3084_v31  ;;  %1661 = vmatprep.subr.bf16.mxu0 %v3085_v32  ;;  %v3127_v0 = vld [vmem:[#allocation2 + $0x104] ss:$16 sps:$4 sm:$0xff]   ;;  %v3131_v2 = vld [vmem:[#allocation2 + $0x100] ss:$16 sps:$4 sm:$0xff]  }
  0x3c   :  { %1702 = vmatprep.subr.bf16.mxu1 %v3087_v33  ;;  %v3129_v1 = vld [vmem:[#allocation2 + $0x304] ss:$16 sps:$4 sm:$0xff]   ;;  %v3132_v3 = vld [vmem:[#allocation2 + $0x300] ss:$16 sps:$4 sm:$0xff]   ;;  %v3667_v33 = vld [vmem:[%s3789_s0 + $0x18] sm:$0xff] }
  0x3d   :  { %v3139_v4 = vld [vmem:[#allocation2 + $0x4e4] ss:$16 sps:$4 sm:$0xff]   ;;  %v3137_v8 = vld [vmem:[#allocation2 + $0x4e0] ss:$16 sps:$4 sm:$0xff]  }
  0x3e   :  { %1662 = vmatpush2.bf16.msra.mxu0 %v3089_v34  ;;  %v3142_v5 = vld [vmem:[#allocation2 + $0x6e4] ss:$16 sps:$4 sm:$0xff]   ;;  %v3140_v9 = vld [vmem:[#allocation2 + $0x6e0] ss:$16 sps:$4 sm:$0xff]  }
  0x3f   :  { %1703 = vmatpush2.bf16.msra.mxu1 %v3090_v35  ;;  %1663 = vmatprep.subr.bf16.mxu0 %v3091_v36  ;;  %v3145_v10 = vld [vmem:[#allocation2 + $0x4c4] ss:$16 sps:$4 sm:$0xff]   ;;  %v3143_v12 = vld [vmem:[#allocation2 + $0x4c0] ss:$16 sps:$4 sm:$0xff]  }
  0x40   :  { %1704 = vmatprep.subr.bf16.mxu1 %v3093_v37  ;;  %v3148_v11 = vld [vmem:[#allocation2 + $0x6c4] ss:$16 sps:$4 sm:$0xff]   ;;  %v3146_v13 = vld [vmem:[#allocation2 + $0x6c0] ss:$16 sps:$4 sm:$0xff]   ;;  %v3675_v37 = vcombine.high %v3667_v33, %v3667_v33 }
  0x41   :  { %v3151_v14 = vld [vmem:[#allocation2 + $0x4a4] ss:$16 sps:$4 sm:$0xff]   ;;  %v3149_v16 = vld [vmem:[#allocation2 + $0x4a0] ss:$16 sps:$4 sm:$0xff]  }
  0x42   :  { %1664 = vmatpush2.bf16.msra.mxu0 %v3095_v38  ;;  %v3154_v15 = vld [vmem:[#allocation2 + $0x6a4] ss:$16 sps:$4 sm:$0xff]   ;;  %v3152_v17 = vld [vmem:[#allocation2 + $0x6a0] ss:$16 sps:$4 sm:$0xff]  }
  0x43   :  { %1705 = vmatpush2.bf16.msra.mxu1 %v3096_v39  ;;  %1665 = vmatprep.subr.bf16.mxu0 %v3097_v40  ;;  %v3157_v18 = vld [vmem:[#allocation2 + $0x484] ss:$16 sps:$4 sm:$0xff]   ;;  %v3155_v20 = vld [vmem:[#allocation2 + $0x480] ss:$16 sps:$4 sm:$0xff]  }
  0x44   :  { %1706 = vmatprep.subr.bf16.mxu1 %v3099_v41  ;;  %v3160_v19 = vld [vmem:[#allocation2 + $0x684] ss:$16 sps:$4 sm:$0xff]   ;;  %v3158_v21 = vld [vmem:[#allocation2 + $0x680] ss:$16 sps:$4 sm:$0xff]  }
  0x45   :  { %v3163_v22 = vld [vmem:[#allocation2 + $0x464] ss:$16 sps:$4 sm:$0xff]   ;;  %v3161_v24 = vld [vmem:[#allocation2 + $0x460] ss:$16 sps:$4 sm:$0xff]  }
  0x46   :  { %1666 = vmatpush2.bf16.msra.mxu0 %v3101_v42  ;;  %v3166_v23 = vld [vmem:[#allocation2 + $0x664] ss:$16 sps:$4 sm:$0xff]   ;;  %v3164_v25 = vld [vmem:[#allocation2 + $0x660] ss:$16 sps:$4 sm:$0xff]  }
  0x47   :  { %1707 = vmatpush2.bf16.msra.mxu1 %v3102_v43  ;;  %1667 = vmatprep.subr.bf16.mxu0 %v3103_v44  ;;  %v3169_v26 = vld [vmem:[#allocation2 + $0x444] ss:$16 sps:$4 sm:$0xff]   ;;  %v3167_v28 = vld [vmem:[#allocation2 + $0x440] ss:$16 sps:$4 sm:$0xff]  }
  0x48   :  { %1708 = vmatprep.subr.bf16.mxu1 %v3105_v45  ;;  %v3172_v27 = vld [vmem:[#allocation2 + $0x644] ss:$16 sps:$4 sm:$0xff]   ;;  %v3170_v29 = vld [vmem:[#allocation2 + $0x640] ss:$16 sps:$4 sm:$0xff]  }
  0x49   :  { %v3175_v30 = vld [vmem:[#allocation2 + $0x424] ss:$16 sps:$4 sm:$0xff]   ;;  %v3173_v34 = vld [vmem:[#allocation2 + $0x420] ss:$16 sps:$4 sm:$0xff]  }
  0x4a   :  { %1668 = vmatpush2.bf16.msra.mxu0 %v3107_v49  ;;  %v3178_v31 = vld [vmem:[#allocation2 + $0x624] ss:$16 sps:$4 sm:$0xff]   ;;  %v3176_v35 = vld [vmem:[#allocation2 + $0x620] ss:$16 sps:$4 sm:$0xff]  }
  0x4b   :  { %1709 = vmatpush2.bf16.msra.mxu1 %v3108_v50  ;;  %1669 = vmatprep.subr.bf16.mxu0 %v3109_v52  ;;  %v3662_v32 = vld [vmem:[%s3789_s0 + $0x10] sm:$0xff] }
  0x4c   :  { %1710 = vmatprep.subr.bf16.mxu1 %v3111_v53  ;;  %v3671_v36 = vcombine.high %v3662_v32, %v3662_v32  ;;  %v3181_v38 = vld [vmem:[#allocation2 + $0x404] ss:$16 sps:$4 sm:$0xff]   ;;  %v3179_v40 = vld [vmem:[#allocation2 + $0x400] ss:$16 sps:$4 sm:$0xff]  }
  0x4d   :  { %v3184_v39 = vld [vmem:[#allocation2 + $0x604] ss:$16 sps:$4 sm:$0xff]   ;;  %v3182_v41 = vld [vmem:[#allocation2 + $0x600] ss:$16 sps:$4 sm:$0xff]  }
  0x4e   :  { %1670 = vmatpush2.bf16.msra.mxu0 %v3113_v54  ;;  %v3187_v42 = vld [vmem:[#allocation2 + $0x5e4] ss:$16 sps:$4 sm:$0xff]   ;;  %v3185_v44 = vld [vmem:[#allocation2 + $0x5e0] ss:$16 sps:$4 sm:$0xff]  }
  0x4f   :  { %1711 = vmatpush2.bf16.msra.mxu1 %v3114_v55  ;;  %1671 = vmatprep.subr.bf16.mxu0 %v3115_v56  ;;  %v3190_v43 = vld [vmem:[#allocation2 + $0x7e4] ss:$16 sps:$4 sm:$0xff]   ;;  %v3188_v45 = vld [vmem:[#allocation2 + $0x7e0] ss:$16 sps:$4 sm:$0xff]  }
  0x50   :  { %1712 = vmatprep.subr.bf16.mxu1 %v3117_v57  ;;  %v3193_v46 = vld [vmem:[#allocation2 + $0x5c4] ss:$16 sps:$4 sm:$0xff]   ;;  %v3191_v49 = vld [vmem:[#allocation2 + $0x5c0] ss:$16 sps:$4 sm:$0xff]  }
  0x51   :  { %v3196_v48 = vld [vmem:[#allocation2 + $0x7c4] ss:$16 sps:$4 sm:$0xff]   ;;  %v3194_v50 = vld [vmem:[#allocation2 + $0x7c0] ss:$16 sps:$4 sm:$0xff]  }
  0x52   :  { %1672 = vmatpush2.bf16.msra.mxu0 %v3119_v58  ;;  %v3199_v52 = vld [vmem:[#allocation2 + $0x5a4] ss:$16 sps:$4 sm:$0xff]   ;;  %v3197_v54 = vld [vmem:[#allocation2 + $0x5a0] ss:$16 sps:$4 sm:$0xff]  }
  0x53   :  { %1713 = vmatpush2.bf16.msra.mxu1 %v3120_v59  ;;  %1673 = vmatprep.subr.bf16.mxu0 %v3121_v60  ;;  %v3202_v53 = vld [vmem:[#allocation2 + $0x7a4] ss:$16 sps:$4 sm:$0xff]   ;;  %v3200_v55 = vld [vmem:[#allocation2 + $0x7a0] ss:$16 sps:$4 sm:$0xff]  }
  0x54   :  { %1714 = vmatprep.subr.bf16.mxu1 %v3123_v61  ;;  %v3205_v56 = vld [vmem:[#allocation2 + $0x584] ss:$16 sps:$4 sm:$0xff]   ;;  %v3203_v58 = vld [vmem:[#allocation2 + $0x580] ss:$16 sps:$4 sm:$0xff]  }
  0x55   :  { %v3208_v57 = vld [vmem:[#allocation2 + $0x784] ss:$16 sps:$4 sm:$0xff]   ;;  %v3206_v59 = vld [vmem:[#allocation2 + $0x780] ss:$16 sps:$4 sm:$0xff]  }
  0x56   :  { %1674 = vmatpush2.bf16.msra.mxu0 %v3125_v62  ;;  %v3211_v60 = vld [vmem:[#allocation2 + $0x564] ss:$16 sps:$4 sm:$0xff]   ;;  %v3209_v62 = vld [vmem:[#allocation2 + $0x560] ss:$16 sps:$4 sm:$0xff]  }
  0x57   :  { %1715 = vmatpush2.bf16.msra.mxu1 %v3126_v63  ;;  %1675 = vmatprep.subr.bf16.mxu0 %v3127_v0  ;;  %v3214_v61 = vld [vmem:[#allocation2 + $0x764] ss:$16 sps:$4 sm:$0xff]   ;;  %v3212_v63 = vld [vmem:[#allocation2 + $0x760] ss:$16 sps:$4 sm:$0xff]  }
  0x58   :  { %1716 = vmatprep.subr.bf16.mxu1 %v3129_v1  ;;  %v3217_v0 = vld [vmem:[#allocation2 + $0x544] ss:$16 sps:$4 sm:$0xff]  }
  0x59   :  { %v3220_v1 = vld [vmem:[#allocation2 + $0x744] ss:$16 sps:$4 sm:$0xff]  }
  0x5a   :  { %1676 = vmatpush2.bf16.msra.mxu0 %v3131_v2  ;;  %v3215_v2 = vld [vmem:[#allocation2 + $0x540] ss:$16 sps:$4 sm:$0xff]  }
  0x5b   :  { %1717 = vmatpush2.bf16.msra.mxu1 %v3132_v3  ;;  %1727 = vmatprep.subr.bf16.mxu0 %v3139_v4  ;;  %v3218_v3 = vld [vmem:[#allocation2 + $0x740] ss:$16 sps:$4 sm:$0xff]   ;;  %v3223_v4 = vld [vmem:[#allocation2 + $0x524] ss:$16 sps:$4 sm:$0xff]  }
  0x5c   :  { %1768 = vmatprep.subr.bf16.mxu1 %v3142_v5  ;;  %v3226_v5 = vld [vmem:[#allocation2 + $0x724] ss:$16 sps:$4 sm:$0xff]  }
  0x5d   :  { %1678 = vmatmul.mubr.bf16.vlgmr.msra.gmra.mxu0 %v3653_v6 }
  0x5e   :  { %1719 = vmatmul.mubr.bf16.vlgmr.msra.gmra.mxu1 %v3655_v7  ;;  %1728 = vmatpush1.bf16.msra.mxu0 %v3137_v8  ;;  %v3221_v8 = vld [vmem:[#allocation2 + $0x520] ss:$16 sps:$4 sm:$0xff]  }
  0x5f   :  { %1769 = vmatpush1.bf16.msra.mxu1 %v3140_v9  ;;  %1729 = vmatprep.subr.bf16.mxu0 %v3145_v10  ;;  %v3224_v9 = vld [vmem:[#allocation2 + $0x720] ss:$16 sps:$4 sm:$0xff]   ;;  %v3229_v10 = vld [vmem:[#allocation2 + $0x504] ss:$16 sps:$4 sm:$0xff]  }
  0x60   :  { %1770 = vmatprep.subr.bf16.mxu1 %v3148_v11  ;;  %1759 = vmatprep.mubr.bf16.mxu0 %v3671_v36  ;;  %v3232_v11 = vld [vmem:[#allocation2 + $0x704] ss:$16 sps:$4 sm:$0xff]  }
  0x61   :  { %1800 = vmatprep.mubr.bf16.mxu1 %v3675_v37 }
  0x62   :  { %1730 = vmatpush1.bf16.msra.mxu0 %v3143_v12  ;;  %v3227_v12 = vld [vmem:[#allocation2 + $0x500] ss:$16 sps:$4 sm:$0xff]  }
  0x63   :  { %1771 = vmatpush1.bf16.msra.mxu1 %v3146_v13  ;;  %1731 = vmatprep.subr.bf16.mxu0 %v3151_v14  ;;  %v3230_v13 = vld [vmem:[#allocation2 + $0x700] ss:$16 sps:$4 sm:$0xff]   ;;  %v3239_v14 = vld [vmem:[#allocation2 + $0xec] ss:$16 sps:$4 sm:$0xff]  }
  0x64   :  { %1772 = vmatprep.subr.bf16.mxu1 %v3154_v15  ;;  %v3242_v15 = vld [vmem:[#allocation2 + $0x2ec] ss:$16 sps:$4 sm:$0xff]  }
  0x66   :  { %1732 = vmatpush1.bf16.msra.mxu0 %v3149_v16  ;;  %v3681_v16 = vcombine.low %v3662_v32, %v3662_v32  ;;  %v3263_v32 = vld [vmem:[#allocation2 + $0x6c] ss:$16 sps:$4 sm:$0xff]  }
  0x67   :  { %1773 = vmatpush1.bf16.msra.mxu1 %v3152_v17  ;;  %1733 = vmatprep.subr.bf16.mxu0 %v3157_v18  ;;  %v3685_v17 = vcombine.low %v3667_v33, %v3667_v33  ;;  %v3237_v18 = vld [vmem:[#allocation2 + $0xe8] ss:$16 sps:$4 sm:$0xff]   ;;  %v3266_v33 = vld [vmem:[#allocation2 + $0x26c] ss:$16 sps:$4 sm:$0xff]  }
  0x68   :  { %1774 = vmatprep.subr.bf16.mxu1 %v3160_v19  ;;  %v3240_v19 = vld [vmem:[#allocation2 + $0x2e8] ss:$16 sps:$4 sm:$0xff]  }
  0x6a   :  { %1734 = vmatpush1.bf16.msra.mxu0 %v3155_v20  ;;  %v3245_v20 = vld [vmem:[#allocation2 + $0xcc] ss:$16 sps:$4 sm:$0xff]  }
  0x6b   :  { %1775 = vmatpush1.bf16.msra.mxu1 %v3158_v21  ;;  %1735 = vmatprep.subr.bf16.mxu0 %v3163_v22  ;;  %v3248_v21 = vld [vmem:[#allocation2 + $0x2cc] ss:$16 sps:$4 sm:$0xff]   ;;  %v3243_v22 = vld [vmem:[#allocation2 + $0xc8] ss:$16 sps:$4 sm:$0xff]  }
  0x6c   :  { %1776 = vmatprep.subr.bf16.mxu1 %v3166_v23  ;;  %v3246_v23 = vld [vmem:[#allocation2 + $0x2c8] ss:$16 sps:$4 sm:$0xff]  }
  0x6e   :  { %1736 = vmatpush1.bf16.msra.mxu0 %v3161_v24  ;;  %v3251_v24 = vld [vmem:[#allocation2 + $0xac] ss:$16 sps:$4 sm:$0xff]  }
  0x6f   :  { %1777 = vmatpush1.bf16.msra.mxu1 %v3164_v25  ;;  %1737 = vmatprep.subr.bf16.mxu0 %v3169_v26  ;;  %v3254_v25 = vld [vmem:[#allocation2 + $0x2ac] ss:$16 sps:$4 sm:$0xff]   ;;  %v3249_v26 = vld [vmem:[#allocation2 + $0xa8] ss:$16 sps:$4 sm:$0xff]  }
  0x70   :  { %1778 = vmatprep.subr.bf16.mxu1 %v3172_v27  ;;  %v3252_v27 = vld [vmem:[#allocation2 + $0x2a8] ss:$16 sps:$4 sm:$0xff]  }
  0x72   :  { %1738 = vmatpush1.bf16.msra.mxu0 %v3167_v28  ;;  %v3257_v28 = vld [vmem:[#allocation2 + $0x8c] ss:$16 sps:$4 sm:$0xff]  }
  0x73   :  { %1779 = vmatpush1.bf16.msra.mxu1 %v3170_v29  ;;  %1739 = vmatprep.subr.bf16.mxu0 %v3175_v30  ;;  %v3260_v29 = vld [vmem:[#allocation2 + $0x28c] ss:$16 sps:$4 sm:$0xff]   ;;  %v3255_v30 = vld [vmem:[#allocation2 + $0x88] ss:$16 sps:$4 sm:$0xff]  }
  0x74   :  { %1780 = vmatprep.subr.bf16.mxu1 %v3178_v31  ;;  %v3258_v31 = vld [vmem:[#allocation2 + $0x288] ss:$16 sps:$4 sm:$0xff]  }
  0x76   :  { %1740 = vmatpush1.bf16.msra.mxu0 %v3173_v34  ;;  %v3261_v34 = vld [vmem:[#allocation2 + $0x68] ss:$16 sps:$4 sm:$0xff]  }
  0x77   :  { %1781 = vmatpush1.bf16.msra.mxu1 %v3176_v35  ;;  %1741 = vmatprep.subr.bf16.mxu0 %v3181_v38  ;;  %v3272_v35 = vld [vmem:[#allocation2 + $0x24c] ss:$16 sps:$4 sm:$0xff]   ;;  %v3267_v38 = vld [vmem:[#allocation2 + $0x48] ss:$16 sps:$4 sm:$0xff]  }
  0x78   :  { %1782 = vmatprep.subr.bf16.mxu1 %v3184_v39  ;;  %v3270_v39 = vld [vmem:[#allocation2 + $0x248] ss:$16 sps:$4 sm:$0xff]  }
  0x7a   :  { %1742 = vmatpush1.bf16.msra.mxu0 %v3179_v40  ;;  %v3275_v40 = vld [vmem:[#allocation2 + $0x2c] ss:$16 sps:$4 sm:$0xff]  }
  0x7b   :  { %1783 = vmatpush1.bf16.msra.mxu1 %v3182_v41  ;;  %1743 = vmatprep.subr.bf16.mxu0 %v3187_v42  ;;  %v3278_v41 = vld [vmem:[#allocation2 + $0x22c] ss:$16 sps:$4 sm:$0xff]   ;;  %v3273_v42 = vld [vmem:[#allocation2 + $0x28] ss:$16 sps:$4 sm:$0xff]  }
  0x7c   :  { %1784 = vmatprep.subr.bf16.mxu1 %v3190_v43  ;;  %v3276_v43 = vld [vmem:[#allocation2 + $0x228] ss:$16 sps:$4 sm:$0xff]  }
  0x7e   :  { %1744 = vmatpush2.bf16.msra.mxu0 %v3185_v44  ;;  %v3281_v44 = vld [vmem:[#allocation2 + $0xc] ss:$16 sps:$4 sm:$0xff]  }
  0x7f   :  { %1785 = vmatpush2.bf16.msra.mxu1 %v3188_v45  ;;  %1745 = vmatprep.subr.bf16.mxu0 %v3193_v46  ;;  %v3284_v45 = vld [vmem:[#allocation2 + $0x20c] ss:$16 sps:$4 sm:$0xff]   ;;  %v3279_v46 = vld [vmem:[#allocation2 + $0x8] ss:$16 sps:$4 sm:$0xff]  }
  0x80   :  { %1786 = vmatprep.subr.bf16.mxu1 %v3196_v48  ;;  %v3282_v48 = vld [vmem:[#allocation2 + $0x208] ss:$16 sps:$4 sm:$0xff]  }
  0x82   :  { %1746 = vmatpush2.bf16.msra.mxu0 %v3191_v49  ;;  %v3287_v49 = vld [vmem:[#allocation2 + $0x1ec] ss:$16 sps:$4 sm:$0xff]  }
  0x83   :  { %1787 = vmatpush2.bf16.msra.mxu1 %v3194_v50  ;;  %1747 = vmatprep.subr.bf16.mxu0 %v3199_v52  ;;  %v3290_v50 = vld [vmem:[#allocation2 + $0x3ec] ss:$16 sps:$4 sm:$0xff]   ;;  %v3285_v52 = vld [vmem:[#allocation2 + $0x1e8] ss:$16 sps:$4 sm:$0xff]  }
  0x84   :  { %1788 = vmatprep.subr.bf16.mxu1 %v3202_v53  ;;  %v3288_v53 = vld [vmem:[#allocation2 + $0x3e8] ss:$16 sps:$4 sm:$0xff]  }
  0x86   :  { %1748 = vmatpush2.bf16.msra.mxu0 %v3197_v54  ;;  %v3293_v54 = vld [vmem:[#allocation2 + $0x1cc] ss:$16 sps:$4 sm:$0xff]  }
  0x87   :  { %1789 = vmatpush2.bf16.msra.mxu1 %v3200_v55  ;;  %1749 = vmatprep.subr.bf16.mxu0 %v3205_v56  ;;  %v3296_v55 = vld [vmem:[#allocation2 + $0x3cc] ss:$16 sps:$4 sm:$0xff]   ;;  %v3291_v56 = vld [vmem:[#allocation2 + $0x1c8] ss:$16 sps:$4 sm:$0xff]  }
  0x88   :  { %1790 = vmatprep.subr.bf16.mxu1 %v3208_v57  ;;  %v3294_v57 = vld [vmem:[#allocation2 + $0x3c8] ss:$16 sps:$4 sm:$0xff]  }
  0x8a   :  { %1750 = vmatpush2.bf16.msra.mxu0 %v3203_v58  ;;  %v3299_v58 = vld [vmem:[#allocation2 + $0x1ac] ss:$16 sps:$4 sm:$0xff]  }
  0x8b   :  { %1791 = vmatpush2.bf16.msra.mxu1 %v3206_v59  ;;  %1751 = vmatprep.subr.bf16.mxu0 %v3211_v60  ;;  %v3302_v59 = vld [vmem:[#allocation2 + $0x3ac] ss:$16 sps:$4 sm:$0xff]   ;;  %v3297_v60 = vld [vmem:[#allocation2 + $0x1a8] ss:$16 sps:$4 sm:$0xff]  }
  0x8c   :  { %1792 = vmatprep.subr.bf16.mxu1 %v3214_v61  ;;  %v3300_v61 = vld [vmem:[#allocation2 + $0x3a8] ss:$16 sps:$4 sm:$0xff]  }
  0x8e   :  { %1752 = vmatpush2.bf16.msra.mxu0 %v3209_v62  ;;  %v3305_v62 = vld [vmem:[#allocation2 + $0x18c] ss:$16 sps:$4 sm:$0xff]  }
  0x8f   :  { %1793 = vmatpush2.bf16.msra.mxu1 %v3212_v63  ;;  %1753 = vmatprep.subr.bf16.mxu0 %v3217_v0  ;;  %v3308_v63 = vld [vmem:[#allocation2 + $0x38c] ss:$16 sps:$4 sm:$0xff]   ;;  %v3303_v0 = vld [vmem:[#allocation2 + $0x188] ss:$16 sps:$4 sm:$0xff]  }
  0x90   :  { %1794 = vmatprep.subr.bf16.mxu1 %v3220_v1  ;;  %v3306_v1 = vld [vmem:[#allocation2 + $0x388] ss:$16 sps:$4 sm:$0xff]  }
  0x92   :  { %1754 = vmatpush2.bf16.msra.mxu0 %v3215_v2  ;;  %v3311_v2 = vld [vmem:[#allocation2 + $0x16c] ss:$16 sps:$4 sm:$0xff]  }
  0x93   :  { %1795 = vmatpush2.bf16.msra.mxu1 %v3218_v3  ;;  %1755 = vmatprep.subr.bf16.mxu0 %v3223_v4  ;;  %v3314_v3 = vld [vmem:[#allocation2 + $0x36c] ss:$16 sps:$4 sm:$0xff]   ;;  %v3309_v4 = vld [vmem:[#allocation2 + $0x168] ss:$16 sps:$4 sm:$0xff]  }
  0x94   :  { %1796 = vmatprep.subr.bf16.mxu1 %v3226_v5  ;;  %v3312_v5 = vld [vmem:[#allocation2 + $0x368] ss:$16 sps:$4 sm:$0xff]  }
  0x96   :  { %1756 = vmatpush2.bf16.msra.mxu0 %v3221_v8  ;;  %v3317_v8 = vld [vmem:[#allocation2 + $0x14c] ss:$16 sps:$4 sm:$0xff]  }
  0x97   :  { %1797 = vmatpush2.bf16.msra.mxu1 %v3224_v9  ;;  %1757 = vmatprep.subr.bf16.mxu0 %v3229_v10  ;;  %v3320_v9 = vld [vmem:[#allocation2 + $0x34c] ss:$16 sps:$4 sm:$0xff]   ;;  %v3315_v10 = vld [vmem:[#allocation2 + $0x148] ss:$16 sps:$4 sm:$0xff]  }
  0x98   :  { %1798 = vmatprep.subr.bf16.mxu1 %v3232_v11  ;;  %v3318_v11 = vld [vmem:[#allocation2 + $0x348] ss:$16 sps:$4 sm:$0xff]  }
  0x9a   :  { %1758 = vmatpush2.bf16.msra.mxu0 %v3227_v12  ;;  %v3323_v12 = vld [vmem:[#allocation2 + $0x12c] ss:$16 sps:$4 sm:$0xff]  }
  0x9b   :  { %1799 = vmatpush2.bf16.msra.mxu1 %v3230_v13  ;;  %1809 = vmatprep.subr.bf16.mxu0 %v3239_v14  ;;  %v3326_v13 = vld [vmem:[#allocation2 + $0x32c] ss:$16 sps:$4 sm:$0xff]   ;;  %v3321_v14 = vld [vmem:[#allocation2 + $0x128] ss:$16 sps:$4 sm:$0xff]  }
  0x9c   :  { %1850 = vmatprep.subr.bf16.mxu1 %v3242_v15  ;;  %v3324_v15 = vld [vmem:[#allocation2 + $0x328] ss:$16 sps:$4 sm:$0xff]  }
  0x9d   :  { %1760 = vmatmul.mubr.bf16.vlgmr.msra.gmra.mxu0 %v3681_v16 }
  0x9e   :  { %1801 = vmatmul.mubr.bf16.vlgmr.msra.gmra.mxu1 %v3685_v17  ;;  %1810 = vmatpush1.bf16.msra.mxu0 %v3237_v18  ;;  %v3329_v18 = vld [vmem:[#allocation2 + $0x10c] ss:$16 sps:$4 sm:$0xff]  }
  0x9f   :  { %1851 = vmatpush1.bf16.msra.mxu1 %v3240_v19  ;;  %1811 = vmatprep.subr.bf16.mxu0 %v3245_v20  ;;  %v3332_v19 = vld [vmem:[#allocation2 + $0x30c] ss:$16 sps:$4 sm:$0xff]   ;;  %v3327_v20 = vld [vmem:[#allocation2 + $0x108] ss:$16 sps:$4 sm:$0xff]  }
  0xa0   :  { %1852 = vmatprep.subr.bf16.mxu1 %v3248_v21  ;;  %1841 = vmatprep.mubr.bf16.mxu0 %v3644_v47  ;;  %v3264_v47 = vld [vmem:[#allocation2 + $0x268] ss:$16 sps:$4 sm:$0xff]  }
  0xa1   :  { %1882 = vmatprep.mubr.bf16.mxu1 %v3649_v51  ;;  %v3269_v51 = vld [vmem:[#allocation2 + $0x4c] ss:$16 sps:$4 sm:$0xff]   ;;  %v3330_v21 = vld [vmem:[#allocation2 + $0x308] ss:$16 sps:$4 sm:$0xff]  }
  0xa2   :  { %1812 = vmatpush1.bf16.msra.mxu0 %v3243_v22  ;;  %v3335_v22 = vld [vmem:[#allocation2 + $0x4ec] ss:$16 sps:$4 sm:$0xff]  }
  0xa3   :  { %1853 = vmatpush1.bf16.msra.mxu1 %v3246_v23  ;;  %1813 = vmatprep.subr.bf16.mxu0 %v3251_v24  ;;  %v3338_v23 = vld [vmem:[#allocation2 + $0x6ec] ss:$16 sps:$4 sm:$0xff]   ;;  %v3333_v24 = vld [vmem:[#allocation2 + $0x4e8] ss:$16 sps:$4 sm:$0xff]  }
  0xa4   :  { %1854 = vmatprep.subr.bf16.mxu1 %v3254_v25  ;;  %v3336_v25 = vld [vmem:[#allocation2 + $0x6e8] ss:$16 sps:$4 sm:$0xff]  }
  0xa6   :  { %1814 = vmatpush1.bf16.msra.mxu0 %v3249_v26  ;;  %v3341_v26 = vld [vmem:[#allocation2 + $0x4cc] ss:$16 sps:$4 sm:$0xff]  }
  0xa7   :  { %1855 = vmatpush1.bf16.msra.mxu1 %v3252_v27  ;;  %1815 = vmatprep.subr.bf16.mxu0 %v3257_v28  ;;  %v3344_v27 = vld [vmem:[#allocation2 + $0x6cc] ss:$16 sps:$4 sm:$0xff]   ;;  %v3339_v28 = vld [vmem:[#allocation2 + $0x4c8] ss:$16 sps:$4 sm:$0xff]  }
  0xa8   :  { %1856 = vmatprep.subr.bf16.mxu1 %v3260_v29  ;;  %v3342_v29 = vld [vmem:[#allocation2 + $0x6c8] ss:$16 sps:$4 sm:$0xff]  }
  0xaa   :  { %1816 = vmatpush1.bf16.msra.mxu0 %v3255_v30  ;;  %v3347_v30 = vld [vmem:[#allocation2 + $0x4ac] ss:$16 sps:$4 sm:$0xff]  }
  0xab   :  { %1857 = vmatpush1.bf16.msra.mxu1 %v3258_v31  ;;  %1817 = vmatprep.subr.bf16.mxu0 %v3263_v32  ;;  %v3350_v31 = vld [vmem:[#allocation2 + $0x6ac] ss:$16 sps:$4 sm:$0xff]   ;;  %v3345_v32 = vld [vmem:[#allocation2 + $0x4a8] ss:$16 sps:$4 sm:$0xff]  }
  0xac   :  { %1858 = vmatprep.subr.bf16.mxu1 %v3266_v33  ;;  %v3348_v33 = vld [vmem:[#allocation2 + $0x6a8] ss:$16 sps:$4 sm:$0xff]  }
  0xae   :  { %1818 = vmatpush1.bf16.msra.mxu0 %v3261_v34  ;;  %v3353_v34 = vld [vmem:[#allocation2 + $0x48c] ss:$16 sps:$4 sm:$0xff]  }
  0xaf   :  { %1859 = vmatpush1.bf16.msra.mxu1 %v3264_v47  ;;  %1819 = vmatprep.subr.bf16.mxu0 %v3269_v51  ;;  %v3356_v47 = vld [vmem:[#allocation2 + $0x68c] ss:$16 sps:$4 sm:$0xff]  }
  0xb0   :  { %1860 = vmatprep.subr.bf16.mxu1 %v3272_v35  ;;  %v3359_v51 = vld [vmem:[#allocation2 + $0x46c] ss:$16 sps:$4 sm:$0xff]  }
  0xb1   :  { %v3362_v35 = vld [vmem:[#allocation2 + $0x66c] ss:$16 sps:$4 sm:$0xff]  }
  0xb2   :  { %1820 = vmatpush1.bf16.msra.mxu0 %v3267_v38  ;;  %v3357_v38 = vld [vmem:[#allocation2 + $0x468] ss:$16 sps:$4 sm:$0xff]  }
  0xb3   :  { %1861 = vmatpush1.bf16.msra.mxu1 %v3270_v39  ;;  %1821 = vmatprep.subr.bf16.mxu0 %v3275_v40  ;;  %v3360_v39 = vld [vmem:[#allocation2 + $0x668] ss:$16 sps:$4 sm:$0xff]   ;;  %v3365_v40 = vld [vmem:[#allocation2 + $0x44c] ss:$16 sps:$4 sm:$0xff]  }
  0xb4   :  { %1862 = vmatprep.subr.bf16.mxu1 %v3278_v41  ;;  %v3366_v41 = vld [vmem:[#allocation2 + $0x648] ss:$16 sps:$4 sm:$0xff]  }
  0xb6   :  { %1822 = vmatpush1.bf16.msra.mxu0 %v3273_v42  ;;  %v3371_v42 = vld [vmem:[#allocation2 + $0x42c] ss:$16 sps:$4 sm:$0xff]  }
  0xb7   :  { %1863 = vmatpush1.bf16.msra.mxu1 %v3276_v43  ;;  %1823 = vmatprep.subr.bf16.mxu0 %v3281_v44  ;;  %v3374_v43 = vld [vmem:[#allocation2 + $0x62c] ss:$16 sps:$4 sm:$0xff]   ;;  %v3369_v44 = vld [vmem:[#allocation2 + $0x428] ss:$16 sps:$4 sm:$0xff]  }
  0xb8   :  { %1864 = vmatprep.subr.bf16.mxu1 %v3284_v45  ;;  %v3372_v45 = vld [vmem:[#allocation2 + $0x628] ss:$16 sps:$4 sm:$0xff]  }
  0xba   :  { %1824 = vmatpush1.bf16.msra.mxu0 %v3279_v46  ;;  %v3377_v46 = vld [vmem:[#allocation2 + $0x40c] ss:$16 sps:$4 sm:$0xff]  }
  0xbb   :  { %1865 = vmatpush1.bf16.msra.mxu1 %v3282_v48  ;;  %1825 = vmatprep.subr.bf16.mxu0 %v3287_v49  ;;  %v3380_v48 = vld [vmem:[#allocation2 + $0x60c] ss:$16 sps:$4 sm:$0xff]   ;;  %v3375_v49 = vld [vmem:[#allocation2 + $0x408] ss:$16 sps:$4 sm:$0xff]  }
  0xbc   :  { %1866 = vmatprep.subr.bf16.mxu1 %v3290_v50  ;;  %v3378_v50 = vld [vmem:[#allocation2 + $0x608] ss:$16 sps:$4 sm:$0xff]  }
  0xbe   :  { %1826 = vmatpush2.bf16.msra.mxu0 %v3285_v52  ;;  %v3383_v52 = vld [vmem:[#allocation2 + $0x5ec] ss:$16 sps:$4 sm:$0xff]  }
  0xbf   :  { %1867 = vmatpush2.bf16.msra.mxu1 %v3288_v53  ;;  %1827 = vmatprep.subr.bf16.mxu0 %v3293_v54  ;;  %v3386_v53 = vld [vmem:[#allocation2 + $0x7ec] ss:$16 sps:$4 sm:$0xff]   ;;  %v3381_v54 = vld [vmem:[#allocation2 + $0x5e8] ss:$16 sps:$4 sm:$0xff]  }
  0xc0   :  { %1868 = vmatprep.subr.bf16.mxu1 %v3296_v55  ;;  %v3384_v55 = vld [vmem:[#allocation2 + $0x7e8] ss:$16 sps:$4 sm:$0xff]  }
  0xc2   :  { %1828 = vmatpush2.bf16.msra.mxu0 %v3291_v56  ;;  %v3389_v56 = vld [vmem:[#allocation2 + $0x5cc] ss:$16 sps:$4 sm:$0xff]  }
  0xc3   :  { %1869 = vmatpush2.bf16.msra.mxu1 %v3294_v57  ;;  %1829 = vmatprep.subr.bf16.mxu0 %v3299_v58  ;;  %v3392_v57 = vld [vmem:[#allocation2 + $0x7cc] ss:$16 sps:$4 sm:$0xff]   ;;  %v3387_v58 = vld [vmem:[#allocation2 + $0x5c8] ss:$16 sps:$4 sm:$0xff]  }
  0xc4   :  { %1870 = vmatprep.subr.bf16.mxu1 %v3302_v59  ;;  %v3390_v59 = vld [vmem:[#allocation2 + $0x7c8] ss:$16 sps:$4 sm:$0xff]  }
  0xc6   :  { %1830 = vmatpush2.bf16.msra.mxu0 %v3297_v60  ;;  %v3395_v60 = vld [vmem:[#allocation2 + $0x5ac] ss:$16 sps:$4 sm:$0xff]  }
  0xc7   :  { %1871 = vmatpush2.bf16.msra.mxu1 %v3300_v61  ;;  %1831 = vmatprep.subr.bf16.mxu0 %v3305_v62  ;;  %v3398_v61 = vld [vmem:[#allocation2 + $0x7ac] ss:$16 sps:$4 sm:$0xff]   ;;  %v3393_v62 = vld [vmem:[#allocation2 + $0x5a8] ss:$16 sps:$4 sm:$0xff]  }
  0xc8   :  { %1872 = vmatprep.subr.bf16.mxu1 %v3308_v63  ;;  %v3396_v63 = vld [vmem:[#allocation2 + $0x7a8] ss:$16 sps:$4 sm:$0xff]  }
  0xca   :  { %1832 = vmatpush2.bf16.msra.mxu0 %v3303_v0  ;;  %v3401_v0 = vld [vmem:[#allocation2 + $0x58c] ss:$16 sps:$4 sm:$0xff]  }
  0xcb   :  { %1873 = vmatpush2.bf16.msra.mxu1 %v3306_v1  ;;  %1833 = vmatprep.subr.bf16.mxu0 %v3311_v2  ;;  %v3404_v1 = vld [vmem:[#allocation2 + $0x78c] ss:$16 sps:$4 sm:$0xff]   ;;  %v3399_v2 = vld [vmem:[#allocation2 + $0x588] ss:$16 sps:$4 sm:$0xff]  }
  0xcc   :  { %1874 = vmatprep.subr.bf16.mxu1 %v3314_v3  ;;  %v3402_v3 = vld [vmem:[#allocation2 + $0x788] ss:$16 sps:$4 sm:$0xff]  }
  0xce   :  { %1834 = vmatpush2.bf16.msra.mxu0 %v3309_v4  ;;  %v3407_v4 = vld [vmem:[#allocation2 + $0x56c] ss:$16 sps:$4 sm:$0xff]  }
  0xcf   :  { %1875 = vmatpush2.bf16.msra.mxu1 %v3312_v5  ;;  %1835 = vmatprep.subr.bf16.mxu0 %v3317_v8  ;;  %v3410_v5 = vld [vmem:[#allocation2 + $0x76c] ss:$16 sps:$4 sm:$0xff]   ;;  %v3405_v8 = vld [vmem:[#allocation2 + $0x568] ss:$16 sps:$4 sm:$0xff]  }
  0xd0   :  { %1876 = vmatprep.subr.bf16.mxu1 %v3320_v9  ;;  %v3408_v9 = vld [vmem:[#allocation2 + $0x768] ss:$16 sps:$4 sm:$0xff]  }
  0xd2   :  { %1836 = vmatpush2.bf16.msra.mxu0 %v3315_v10  ;;  %v3413_v10 = vld [vmem:[#allocation2 + $0x54c] ss:$16 sps:$4 sm:$0xff]  }
  0xd3   :  { %1877 = vmatpush2.bf16.msra.mxu1 %v3318_v11  ;;  %1837 = vmatprep.subr.bf16.mxu0 %v3323_v12  ;;  %v3416_v11 = vld [vmem:[#allocation2 + $0x74c] ss:$16 sps:$4 sm:$0xff]   ;;  %v3411_v12 = vld [vmem:[#allocation2 + $0x548] ss:$16 sps:$4 sm:$0xff]  }
  0xd4   :  { %1878 = vmatprep.subr.bf16.mxu1 %v3326_v13  ;;  %v3414_v13 = vld [vmem:[#allocation2 + $0x748] ss:$16 sps:$4 sm:$0xff]  }
  0xd6   :  { %1838 = vmatpush2.bf16.msra.mxu0 %v3321_v14  ;;  %v3419_v14 = vld [vmem:[#allocation2 + $0x52c] ss:$16 sps:$4 sm:$0xff]  }
  0xd7   :  { %1879 = vmatpush2.bf16.msra.mxu1 %v3324_v15  ;;  %1839 = vmatprep.subr.bf16.mxu0 %v3329_v18  ;;  %v3422_v15 = vld [vmem:[#allocation2 + $0x72c] ss:$16 sps:$4 sm:$0xff]   ;;  %v3417_v18 = vld [vmem:[#allocation2 + $0x528] ss:$16 sps:$4 sm:$0xff]  }
  0xd8   :  { %1880 = vmatprep.subr.bf16.mxu1 %v3332_v19  ;;  %v3420_v19 = vld [vmem:[#allocation2 + $0x728] ss:$16 sps:$4 sm:$0xff]  }
  0xda   :  { %1840 = vmatpush2.bf16.msra.mxu0 %v3327_v20  ;;  %v3425_v20 = vld [vmem:[#allocation2 + $0x50c] ss:$16 sps:$4 sm:$0xff]  }
  0xdb   :  { %1881 = vmatpush2.bf16.msra.mxu1 %v3330_v21  ;;  %1891 = vmatprep.subr.bf16.mxu0 %v3335_v22  ;;  %v3428_v21 = vld [vmem:[#allocation2 + $0x70c] ss:$16 sps:$4 sm:$0xff]   ;;  %v3423_v22 = vld [vmem:[#allocation2 + $0x508] ss:$16 sps:$4 sm:$0xff]  }
  0xdc   :  { %1932 = vmatprep.subr.bf16.mxu1 %v3338_v23  ;;  %v3426_v23 = vld [vmem:[#allocation2 + $0x708] ss:$16 sps:$4 sm:$0xff]  }
  0xdd   :  { %1842 = vmatmul.mubr.bf16.vlgmr.msra.gmra.mxu0 %v3653_v6  ;;  %v3351_v6 = vld [vmem:[#allocation2 + $0x488] ss:$16 sps:$4 sm:$0xff]  }
  0xde   :  { %1883 = vmatmul.mubr.bf16.vlgmr.msra.gmra.mxu1 %v3655_v7  ;;  %1892 = vmatpush1.bf16.msra.mxu0 %v3333_v24  ;;  %v3354_v7 = vld [vmem:[#allocation2 + $0x688] ss:$16 sps:$4 sm:$0xff]   ;;  %v3431_v24 = vld [vmem:[#allocation4 + $0x74] ss:$8 sps:$4 sm:$0xff]  }
  0xdf   :  { %1933 = vmatpush1.bf16.msra.mxu1 %v3336_v25  ;;  %1893 = vmatprep.subr.bf16.mxu0 %v3341_v26  ;;  %v3429_v25 = vld [vmem:[#allocation4 + $0x70] ss:$8 sps:$4 sm:$0xff]   ;;  %v3434_v26 = vld [vmem:[#allocation4 + $0x64] ss:$8 sps:$4 sm:$0xff]  }
  0xe0   :  { %1934 = vmatprep.subr.bf16.mxu1 %v3344_v27  ;;  %1923 = vmatprep.mubr.bf16.mxu0 %v3671_v36  ;;  %v3368_v36 = vld [vmem:[#allocation2 + $0x64c] ss:$16 sps:$4 sm:$0xff]  }
  0xe1   :  { %1964 = vmatprep.mubr.bf16.mxu1 %v3675_v37  ;;  %v3363_v37 = vld [vmem:[#allocation2 + $0x448] ss:$16 sps:$4 sm:$0xff]  }
  0xe2   :  { %1894 = vmatpush1.bf16.msra.mxu0 %v3339_v28 }
  0xe3   :  { %1935 = vmatpush1.bf16.msra.mxu1 %v3342_v29  ;;  %1895 = vmatprep.subr.bf16.mxu0 %v3347_v30  ;;  %v3432_v29 = vld [vmem:[#allocation4 + $0x60] ss:$8 sps:$4 sm:$0xff]  }
  0xe4   :  { %1936 = vmatprep.subr.bf16.mxu1 %v3350_v31 }
  0xe6   :  { %1896 = vmatpush1.bf16.msra.mxu0 %v3345_v32  ;;  %v3437_v32 = vld [vmem:[#allocation4 + $0x54] ss:$8 sps:$4 sm:$0xff]  }
  0xe7   :  { %1937 = vmatpush1.bf16.msra.mxu1 %v3348_v33  ;;  %1897 = vmatprep.subr.bf16.mxu0 %v3353_v34 }
  0xe8   :  { %1938 = vmatprep.subr.bf16.mxu1 %v3356_v47  ;;  %v3435_v47 = vld [vmem:[#allocation4 + $0x50] ss:$8 sps:$4 sm:$0xff]  }
  0xea   :  { %1898 = vmatpush1.bf16.msra.mxu0 %v3351_v6 }
  0xeb   :  { %1939 = vmatpush1.bf16.msra.mxu1 %v3354_v7  ;;  %1899 = vmatprep.subr.bf16.mxu0 %v3359_v51  ;;  %v3440_v51 = vld [vmem:[#allocation4 + $0x44] ss:$8 sps:$4 sm:$0xff]  }
  0xec   :  { %1940 = vmatprep.subr.bf16.mxu1 %v3362_v35  ;;  %v3477_v35 = vld [vmem:[#allocation4 + $0x170] ss:$8 sps:$4 sm:$0xff]  }
  0xee   :  { %1900 = vmatpush1.bf16.msra.mxu0 %v3357_v38  ;;  %v3482_v38 = vld [vmem:[#allocation4 + $0x164] ss:$8 sps:$4 sm:$0xff]  }
  0xef   :  { %1941 = vmatpush1.bf16.msra.mxu1 %v3360_v39  ;;  %1901 = vmatprep.subr.bf16.mxu0 %v3365_v40  ;;  %v3480_v39 = vld [vmem:[#allocation4 + $0x160] ss:$8 sps:$4 sm:$0xff]   ;;  %v3443_v40 = vld [vmem:[#allocation4 + $0x34] ss:$8 sps:$4 sm:$0xff]  }
  0xf0   :  { %1942 = vmatprep.subr.bf16.mxu1 %v3368_v36  ;;  %v3485_v36 = vld [vmem:[#allocation4 + $0x154] ss:$8 sps:$4 sm:$0xff]  }
  0xf2   :  { %1902 = vmatpush1.bf16.msra.mxu0 %v3363_v37  ;;  %v3441_v37 = vld [vmem:[#allocation4 + $0x30] ss:$8 sps:$4 sm:$0xff]  }
  0xf3   :  { %1943 = vmatpush1.bf16.msra.mxu1 %v3366_v41  ;;  %1903 = vmatprep.subr.bf16.mxu0 %v3371_v42  ;;  %v3483_v41 = vld [vmem:[#allocation4 + $0x150] ss:$8 sps:$4 sm:$0xff]   ;;  %v3446_v42 = vld [vmem:[#allocation4 + $0x24] ss:$8 sps:$4 sm:$0xff]  }
  0xf4   :  { %1944 = vmatprep.subr.bf16.mxu1 %v3374_v43  ;;  %v3488_v43 = vld [vmem:[#allocation4 + $0x144] ss:$8 sps:$4 sm:$0xff]  }
  0xf6   :  { %1904 = vmatpush1.bf16.msra.mxu0 %v3369_v44  ;;  %v3444_v44 = vld [vmem:[#allocation4 + $0x20] ss:$8 sps:$4 sm:$0xff]  }
  0xf7   :  { %1945 = vmatpush1.bf16.msra.mxu1 %v3372_v45  ;;  %1905 = vmatprep.subr.bf16.mxu0 %v3377_v46  ;;  %v3486_v45 = vld [vmem:[#allocation4 + $0x140] ss:$8 sps:$4 sm:$0xff]   ;;  %v3449_v46 = vld [vmem:[#allocation4 + $0x14] ss:$8 sps:$4 sm:$0xff]  }
  0xf8   :  { %1946 = vmatprep.subr.bf16.mxu1 %v3380_v48  ;;  %v3491_v48 = vld [vmem:[#allocation4 + $0x134] ss:$8 sps:$4 sm:$0xff]  }
  0xfa   :  { %1906 = vmatpush1.bf16.msra.mxu0 %v3375_v49  ;;  %v3447_v49 = vld [vmem:[#allocation4 + $0x10] ss:$8 sps:$4 sm:$0xff]  }
  0xfb   :  { %1947 = vmatpush1.bf16.msra.mxu1 %v3378_v50  ;;  %1907 = vmatprep.subr.bf16.mxu0 %v3383_v52  ;;  %v3489_v50 = vld [vmem:[#allocation4 + $0x130] ss:$8 sps:$4 sm:$0xff]   ;;  %v3452_v52 = vld [vmem:[#allocation4 + $0x4] ss:$8 sps:$4 sm:$0xff]  }
  0xfc   :  { %1948 = vmatprep.subr.bf16.mxu1 %v3386_v53  ;;  %v3494_v53 = vld [vmem:[#allocation4 + $0x124] ss:$8 sps:$4 sm:$0xff]  }
  0xfe   :  { %1908 = vmatpush2.bf16.msra.mxu0 %v3381_v54  ;;  %v3450_v54 = vld [vmem:[#allocation4] ss:$8 sps:$4 sm:$0xff]  }
  0xff   :  { %1949 = vmatpush2.bf16.msra.mxu1 %v3384_v55  ;;  %1909 = vmatprep.subr.bf16.mxu0 %v3389_v56  ;;  %v3492_v55 = vld [vmem:[#allocation4 + $0x120] ss:$8 sps:$4 sm:$0xff]   ;;  %v3455_v56 = vld [vmem:[#allocation4 + $0xf4] ss:$8 sps:$4 sm:$0xff]  }
 0x100   :  { %1950 = vmatprep.subr.bf16.mxu1 %v3392_v57  ;;  %v3497_v57 = vld [vmem:[#allocation4 + $0x114] ss:$8 sps:$4 sm:$0xff]  }
 0x102   :  { %1910 = vmatpush2.bf16.msra.mxu0 %v3387_v58  ;;  %v3453_v58 = vld [vmem:[#allocation4 + $0xf0] ss:$8 sps:$4 sm:$0xff]  }
 0x103   :  { %1951 = vmatpush2.bf16.msra.mxu1 %v3390_v59  ;;  %1911 = vmatprep.subr.bf16.mxu0 %v3395_v60  ;;  %v3495_v59 = vld [vmem:[#allocation4 + $0x110] ss:$8 sps:$4 sm:$0xff]   ;;  %v3458_v60 = vld [vmem:[#allocation4 + $0xe4] ss:$8 sps:$4 sm:$0xff]  }
 0x104   :  { %1952 = vmatprep.subr.bf16.mxu1 %v3398_v61  ;;  %v3500_v61 = vld [vmem:[#allocation4 + $0x104] ss:$8 sps:$4 sm:$0xff]  }
 0x106   :  { %1912 = vmatpush2.bf16.msra.mxu0 %v3393_v62  ;;  %v3456_v62 = vld [vmem:[#allocation4 + $0xe0] ss:$8 sps:$4 sm:$0xff]  }
 0x107   :  { %1953 = vmatpush2.bf16.msra.mxu1 %v3396_v63  ;;  %1913 = vmatprep.subr.bf16.mxu0 %v3401_v0  ;;  %v3498_v63 = vld [vmem:[#allocation4 + $0x100] ss:$8 sps:$4 sm:$0xff]   ;;  %v3461_v0 = vld [vmem:[#allocation4 + $0xd4] ss:$8 sps:$4 sm:$0xff]  }
 0x108   :  { %1954 = vmatprep.subr.bf16.mxu1 %v3404_v1  ;;  %v3503_v1 = vld [vmem:[#allocation4 + $0x1f4] ss:$8 sps:$4 sm:$0xff]  }
 0x10a   :  { %1914 = vmatpush2.bf16.msra.mxu0 %v3399_v2  ;;  %v3459_v2 = vld [vmem:[#allocation4 + $0xd0] ss:$8 sps:$4 sm:$0xff]  }
 0x10b   :  { %1955 = vmatpush2.bf16.msra.mxu1 %v3402_v3  ;;  %1915 = vmatprep.subr.bf16.mxu0 %v3407_v4  ;;  %v3501_v3 = vld [vmem:[#allocation4 + $0x1f0] ss:$8 sps:$4 sm:$0xff]   ;;  %v3464_v4 = vld [vmem:[#allocation4 + $0xc4] ss:$8 sps:$4 sm:$0xff]  }
 0x10c   :  { %1956 = vmatprep.subr.bf16.mxu1 %v3410_v5  ;;  %v3506_v5 = vld [vmem:[#allocation4 + $0x1e4] ss:$8 sps:$4 sm:$0xff]  }
 0x10e   :  { %1916 = vmatpush2.bf16.msra.mxu0 %v3405_v8  ;;  %v3462_v8 = vld [vmem:[#allocation4 + $0xc0] ss:$8 sps:$4 sm:$0xff]  }
 0x10f   :  { %1957 = vmatpush2.bf16.msra.mxu1 %v3408_v9  ;;  %1917 = vmatprep.subr.bf16.mxu0 %v3413_v10  ;;  %v3504_v9 = vld [vmem:[#allocation4 + $0x1e0] ss:$8 sps:$4 sm:$0xff]   ;;  %v3467_v10 = vld [vmem:[#allocation4 + $0xb4] ss:$8 sps:$4 sm:$0xff]  }
 0x110   :  { %1958 = vmatprep.subr.bf16.mxu1 %v3416_v11  ;;  %v3509_v11 = vld [vmem:[#allocation4 + $0x1d4] ss:$8 sps:$4 sm:$0xff]  }
 0x112   :  { %1918 = vmatpush2.bf16.msra.mxu0 %v3411_v12  ;;  %v317_v12 = vlaneseq }
 0x113   :  { %1959 = vmatpush2.bf16.msra.mxu1 %v3414_v13  ;;  %1919 = vmatprep.subr.bf16.mxu0 %v3419_v14  ;;  %v3465_v13 = vld [vmem:[#allocation4 + $0xb0] ss:$8 sps:$4 sm:$0xff]  }
 0x114   :  { %1960 = vmatprep.subr.bf16.mxu1 %v3422_v15  ;;  %v3507_v14 = vld [vmem:[#allocation4 + $0x1d0] ss:$8 sps:$4 sm:$0xff]   ;;  %v3470_v15 = vld [vmem:[#allocation4 + $0xa4] ss:$8 sps:$4 sm:$0xff]  }
 0x116   :  { %1920 = vmatpush2.bf16.msra.mxu0 %v3417_v18  ;;  %v3512_v18 = vld [vmem:[#allocation4 + $0x1c4] ss:$8 sps:$4 sm:$0xff]  }
 0x117   :  { %1961 = vmatpush2.bf16.msra.mxu1 %v3420_v19  ;;  %1921 = vmatprep.subr.bf16.mxu0 %v3425_v20  ;;  %v3705_v19 = vshrl.u32 %v317_v12, 7  ;;  %v3468_v20 = vld [vmem:[#allocation4 + $0xa0] ss:$8 sps:$4 sm:$0xff]   ;;  %v3534_v12 = vld [vmem:[%s3794_s5 + $0x18] sm:$0xff]  }
 0x118   :  { %1962 = vmatprep.subr.bf16.mxu1 %v3428_v21  ;;  %v3510_v21 = vld [vmem:[#allocation4 + $0x1c0] ss:$8 sps:$4 sm:$0xff]  }
 0x11a   :  { %1922 = vmatpush2.bf16.msra.mxu0 %v3423_v22  ;;  %v3473_v22 = vld [vmem:[#allocation4 + $0x94] ss:$8 sps:$4 sm:$0xff]  }
 0x11b   :  { %1963 = vmatpush2.bf16.msra.mxu1 %v3426_v23  ;;  %2385 = vmatprep.subr.bf16.mxu0 %v3431_v24  ;;  %v3515_v23 = vld [vmem:[#allocation4 + $0x1b4] ss:$8 sps:$4 sm:$0xff]   ;;  %v319_v24 = vsub.s32 0, %v3705_v19 }
 0x11d   :  { %v3695_v27 = vpop.f32.mrf.mxu0  ;;  %1924 = vmatmul.mubr.bf16.vlgmr.msra.gmra.mxu0 %v3681_v16  ;;  %v3479_v16 = vld [vmem:[#allocation4 + $0x174] ss:$8 sps:$4 sm:$0xff]  }
 0x11e   :  { %v3697_v28 = vpop.f32.mrf.mxu1  ;;  %1965 = vmatmul.mubr.bf16.vlgmr.msra.gmra.mxu1 %v3685_v17  ;;  %2386 = vmatpush1.bf16.msra.mxu0 %v3429_v25  ;;  %v3438_v17 = vld [vmem:[#allocation4 + $0x40] ss:$8 sps:$4 sm:$0xff]  }
 0x11f   :  { %v3701_v30 = vpop.f32.mrf.mxu0  ;;  %2387 = vmatprep.subr.bf16.mxu0 %v3434_v26  ;;  %2426 = vmatprep.subr.bf16.mxu1 %v3479_v16  ;;  %v3711_v25 = vld [vmem:[%s3791_s2] sm:$0xf]  ;;  %v323_v26 = vsub.s32 1, %v3705_v19  ;;  %v3518_v16 = vld [vmem:[#allocation4 + $0x1a4] ss:$8 sps:$4 sm:$0xff]  }
 0x120   :  { %v3703_v31 = vpop.f32.mrf.mxu1  ;;  %2427 = vmatpush1.bf16.msra.mxu1 %v3477_v35 }
 0x121   :  { %v1683_v33 = vpop.f32.mrf.mxu0  ;;  %2428 = vmatprep.subr.bf16.mxu1 %v3482_v38 }
 0x122   :  { %v1724_v34 = vpop.f32.mrf.mxu1  ;;  %2388 = vmatpush1.bf16.msra.mxu0 %v3432_v29  ;;  %v3471_v29 = vld [vmem:[#allocation4 + $0x90] ss:$8 sps:$4 sm:$0xff]   ;;  %v3476_v33 = vld [vmem:[#allocation4 + $0x84] ss:$8 sps:$4 sm:$0xff]  }
 0x123   :  { %v1684_v6 = vpop.f32.mrf.mxu0  ;;  %2389 = vmatprep.subr.bf16.mxu0 %v3437_v32  ;;  %v3513_v32 = vld [vmem:[#allocation4 + $0x1b0] ss:$8 sps:$4 sm:$0xff]   ;;  %v320_v34 = vrot.slane %v3711_v25, %v319_v24 }
 0x124   :  { %v1725_v7 = vpop.f32.mrf.mxu1  ;;  %2429 = vmatpush1.bf16.msra.mxu1 %v3480_v39  ;;  %v3474_v6 = vld [vmem:[#allocation4 + $0x80] ss:$8 sps:$4 sm:$0xff]  }
 0x125   :  { %2430 = vmatprep.subr.bf16.mxu1 %v3485_v36  ;;  %v1680_v7 = vadd.f32 %v3695_v27, %v320_v34  ;;  %v3516_v39 = vld [vmem:[#allocation4 + $0x1a0] ss:$8 sps:$4 sm:$0xff]  }
 0x126   :  { %2390 = vmatpush1.bf16.msra.mxu0 %v3435_v47  ;;  %v324_v47 = vrot.slane %v3711_v25, %v323_v26 }
 0x127   :  { %2391 = vmatprep.subr.bf16.mxu0 %v3440_v51  ;;  %v1721_v35 = vadd.f32 %v3697_v28, %v1680_v7 }
 0x128   :  { %2431 = vmatpush1.bf16.msra.mxu1 %v3483_v41  ;;  %v1682_v51 = vadd.f32 %v3701_v30, %v324_v47  ;;  %v3519_v30 = vld [vmem:[#allocation4 + $0x190] ss:$8 sps:$4 sm:$0xff]  }
 0x129   :  { %2432 = vmatprep.subr.bf16.mxu1 %v3488_v43 }
 0x12a   :  { %2392 = vmatpush1.bf16.msra.mxu0 %v3438_v17 }
 0x12b   :  { %2393 = vmatprep.subr.bf16.mxu0 %v3443_v40  ;;  %v1723_v40 = vadd.f32 %v3703_v31, %v1682_v51 }
 0x12c   :  { %2433 = vmatpush1.bf16.msra.mxu1 %v3486_v45 }
 0x12d   :  { %2434 = vmatprep.subr.bf16.mxu1 %v3491_v48 }
 0x12e   :  { %2394 = vmatpush1.bf16.msra.mxu0 %v3441_v37 }
 0x12f   :  { %2395 = vmatprep.subr.bf16.mxu0 %v3446_v42 }
 0x130   :  { %2435 = vmatpush1.bf16.msra.mxu1 %v3489_v50  ;;  %v3524_v50 = vld [vmem:[#allocation4 + $0x184] ss:$8 sps:$4 sm:$0xff]  }
 0x131   :  { %2436 = vmatprep.subr.bf16.mxu1 %v3494_v53  ;;  %v3522_v53 = vld [vmem:[#allocation4 + $0x180] ss:$8 sps:$4 sm:$0xff]  }
 0x132   :  { %2396 = vmatpush1.bf16.msra.mxu0 %v3444_v44  ;;  %v3521_v44 = vld [vmem:[#allocation4 + $0x194] ss:$8 sps:$4 sm:$0xff]  }
 0x133   :  { %2397 = vmatprep.subr.bf16.mxu0 %v3449_v46 }
 0x134   :  { %2437 = vmatpush1.bf16.msra.mxu1 %v3492_v55 }
 0x135   :  { %2438 = vmatprep.subr.bf16.mxu1 %v3497_v57 }
 0x136   :  { %2398 = vmatpush1.bf16.msra.mxu0 %v3447_v49 }
 0x137   :  { %2399 = vmatprep.subr.bf16.mxu0 %v3452_v52 }
 0x138   :  { %2439 = vmatpush1.bf16.msra.mxu1 %v3495_v59 }
 0x139   :  { %2440 = vmatprep.subr.bf16.mxu1 %v3500_v61 }
 0x13a   :  { %2400 = vmatpush1.bf16.msra.mxu0 %v3450_v54 }
 0x13b   :  { %2401 = vmatprep.subr.bf16.mxu0 %v3455_v56 }
 0x13c   :  { %2441 = vmatpush1.bf16.msra.mxu1 %v3498_v63 }
 0x13d   :  { %2442 = vmatprep.subr.bf16.mxu1 %v3503_v1  ;;  %v3525_v1 = vld [vmem:[%s3794_s5 + $0x78] sm:$0xff]  }
 0x13e   :  { %2402 = vmatpush2.bf16.msra.mxu0 %v3453_v58 }
 0x13f   :  { %2403 = vmatprep.subr.bf16.mxu0 %v3458_v60 }
 0x140   :  { %2443 = vmatpush2.bf16.msra.mxu1 %v3501_v3  ;;  %v3527_v3 = vld [vmem:[%s3794_s5 + $0x70] sm:$0xff]  }
 0x141   :  { %2444 = vmatprep.subr.bf16.mxu1 %v3506_v5  ;;  %v3529_v5 = vld [vmem:[%s3794_s5 + $0x68] sm:$0xff]  }
 0x142   :  { %2404 = vmatpush2.bf16.msra.mxu0 %v3456_v62 }
 0x143   :  { %2405 = vmatprep.subr.bf16.mxu0 %v3461_v0 }
 0x144   :  { %2445 = vmatpush2.bf16.msra.mxu1 %v3504_v9  ;;  %v3531_v9 = vld [vmem:[%s3794_s5 + $0x60] sm:$0xff]  }
 0x145   :  { %2446 = vmatprep.subr.bf16.mxu1 %v3509_v11  ;;  %v3533_v11 = vld [vmem:[%s3794_s5 + $0x58] sm:$0xff]  }
 0x146   :  { %2406 = vmatpush2.bf16.msra.mxu0 %v3459_v2  ;;  %v3526_v2 = vld [vmem:[%s3794_s5 + $0x38] sm:$0xff]  }
 0x147   :  { %2407 = vmatprep.subr.bf16.mxu0 %v3464_v4  ;;  %v3528_v4 = vld [vmem:[%s3794_s5 + $0x30] sm:$0xff]  }
 0x148   :  { %2447 = vmatpush2.bf16.msra.mxu1 %v3507_v14  ;;  %v327_v14 = vsub.s32 2, %v3705_v19 }
 0x149   :  { %2448 = vmatprep.subr.bf16.mxu1 %v3512_v18 }
 0x14a   :  { %2408 = vmatpush2.bf16.msra.mxu0 %v3462_v8  ;;  %v3530_v8 = vld [vmem:[%s3794_s5 + $0x28] sm:$0xff]   ;;  %v328_v18 = vrot.slane %v3711_v25, %v327_v14 }
 0x14b   :  { %2409 = vmatprep.subr.bf16.mxu0 %v3467_v10  ;;  %v3532_v10 = vld [vmem:[%s3794_s5 + $0x20] sm:$0xff]  }
 0x14c   :  { %2449 = vmatpush2.bf16.msra.mxu1 %v3510_v21 }
 0x14d   :  { %2450 = vmatprep.subr.bf16.mxu1 %v3515_v23 }
 0x14e   :  { %2410 = vmatpush2.bf16.msra.mxu0 %v3465_v13  ;;  %v3535_v13 = vld [vmem:[%s3794_s5 + $0x50] sm:$0xff]  }
 0x14f   :  { %2411 = vmatprep.subr.bf16.mxu0 %v3470_v15  ;;  %v331_v15 = vsub.s32 3, %v3705_v19 }
 0x150   :  { %2451 = vmatpush2.bf16.msra.mxu1 %v3513_v32 }
 0x151   :  { %2452 = vmatprep.subr.bf16.mxu1 %v3518_v16 }
 0x152   :  { %2412 = vmatpush2.bf16.msra.mxu0 %v3468_v20  ;;  %v332_v20 = vrot.slane %v3711_v25, %v331_v15 }
 0x153   :  { %2413 = vmatprep.subr.bf16.mxu0 %v3473_v22 }
 0x154   :  { %2453 = vmatpush2.bf16.msra.mxu1 %v3516_v39 }
 0x155   :  { %2454 = vmatprep.subr.bf16.mxu1 %v3521_v44 }
 0x156   :  { %2414 = vmatpush2.bf16.msra.mxu0 %v3471_v29 }
 0x157   :  { %2415 = vmatprep.subr.bf16.mxu0 %v3476_v33 }
 0x158   :  { %2455 = vmatpush2.bf16.msra.mxu1 %v3519_v30  ;;  %v3538_v30 = vld [vmem:[%s3794_s5 + $0x8] sm:$0xff]  }
 0x159   :  { %2456 = vmatprep.subr.bf16.mxu1 %v3524_v50 }
 0x15a   :  { %2416 = vmatpush2.bf16.msra.mxu0 %v3474_v6 }
 0x15b   :  { %3009 = vmatprep.subr.bf16.mxu0 %v3525_v1 }
 0x15c   :  { %2457 = vmatpush2.bf16.msra.mxu1 %v3522_v53 }
 0x15d   :  { %v1761_v38 = vpop.f32.mrf.mxu0 }
 0x15e   :  { %v1802_v17 = vpop.f32.mrf.mxu1  ;;  %v1762_v36 = vadd.f32 %v1761_v38, %v1721_v35 }
 0x15f   :  { %v1763_v37 = vpop.f32.mrf.mxu0 }
 0x160   :  { %v1804_v41 = vpop.f32.mrf.mxu1  ;;  %v1803_v42 = vadd.f32 %v1802_v17, %v1762_v36  ;;  %v1764_v43 = vadd.f32 %v1763_v37, %v1723_v40 }
 0x161   :  { %v1765_v27 = vpop.f32.mrf.mxu0 }
 0x162   :  { %v1806_v45 = vpop.f32.mrf.mxu1  ;;  %vm1973_vm0 = vcmp.gt.f32.partialorder %v1803_v42, 0.0  ;;  %v1977_v46 = vmul.f32 0.2, %v1803_v42  ;;  %v1805_v28 = vadd.f32 %v1804_v41, %v1764_v43  ;;  %v3536_v43 = vld [vmem:[%s3794_s5 + $0x10] sm:$0xff]   ;;  %v3537_v27 = vld [vmem:[%s3794_s5 + $0x48] sm:$0xff]  }
 0x163   :  { %v1766_v48 = vpop.f32.mrf.mxu0 }
 0x164   :  { %v1807_v49 = vpop.f32.mrf.mxu1  ;;  %vm1974_vm1 = vcmp.gt.f32.partialorder %v1805_v28, 0.0  ;;  %v1978_v31 = vmul.f32 0.2, %v1805_v28  ;;  %v1981_v52 = vsel %vm1973_vm0, %v1803_v42, %v1977_v46 }
 0x165   :  { %v1985_v56 = vpack.c.bf16 %v1981_v52, %v1981_v52  ;;  %v3540_v49 = vld [vmem:[%s3794_s5] sm:$0xff]  }
 0x166   :  { %v1982_v54 = vsel %vm1974_vm1, %v1805_v28, %v1978_v31  ;;  %v3539_v28 = vld [vmem:[%s3794_s5 + $0x40] sm:$0xff]  }
 0x167   :  { %v1986_v55 = vpack.c.bf16 %v1982_v54, %v1982_v54  ;;  %v2053_v31 = vld [vmem:[%s3793_s4] sm:$0x3] }
 0x168   :  { %v2058_v50 = vrot.slane %v2053_v31, %v319_v24  ;;  %v2062_v52 = vrot.slane %v2053_v31, %v323_v26  ;;  %v2991_v24 = vld [vmem:[%s3795_s6] ss:$0 sm:$0xff] }
 0x169   :  { %2417 = vmatprep.mubr.bf16.mxu0 %v1986_v55 }
 0x16a   :  { %2418 = vmatmul.mubr.bf16.vlgmr.msra.gmra.mxu0 %v1985_v56 }
 0x16b   :  { %3010 = vmatpush3.bf16.msra.mxu0 %v3526_v2 }
 0x16c   :  { %3011 = vmatprep.subr.bf16.mxu0 %v3527_v3 }
 0x16f   :  { %3012 = vmatpush3.bf16.msra.mxu0 %v3528_v4 }
 0x170   :  { %3013 = vmatprep.subr.bf16.mxu0 %v3529_v5 }
 0x173   :  { %3014 = vmatpush3.bf16.msra.mxu0 %v3530_v8 }
 0x174   :  { %3015 = vmatprep.subr.bf16.mxu0 %v3531_v9 }
 0x177   :  { %3016 = vmatpush3.bf16.msra.mxu0 %v3532_v10 }
 0x178   :  { %3017 = vmatprep.subr.bf16.mxu0 %v3533_v11 }
 0x17b   :  { %3018 = vmatpush3.bf16.msra.mxu0 %v3534_v12 }
 0x17c   :  { %3019 = vmatprep.subr.bf16.mxu0 %v3535_v13 }
 0x17f   :  { %3020 = vmatpush3.bf16.msra.mxu0 %v3536_v43 }
 0x180   :  { %3021 = vmatprep.subr.bf16.mxu0 %v3537_v27 }
 0x183   :  { %3022 = vmatpush3.bf16.msra.mxu0 %v3538_v30 }
 0x184   :  { %3023 = vmatprep.subr.bf16.mxu0 %v3539_v28 }
 0x187   :  { %3024 = vmatpush3.bf16.msra.mxu0 %v3540_v49 }
 0x19d   :  { %v1843_v57 = vpop.f32.mrf.mxu0 }
 0x19e   :  { %v1884_v58 = vpop.f32.mrf.mxu1  ;;  %v1844_v21 = vadd.f32 %v1843_v57, %v328_v18 }
 0x19f   :  { %v1845_v59 = vpop.f32.mrf.mxu0 }
 0x1a0   :  { %v1886_v60 = vpop.f32.mrf.mxu1  ;;  %v1846_v22 = vadd.f32 %v1845_v59, %v332_v20  ;;  %v1885_v23 = vadd.f32 %v1884_v58, %v1844_v21 }
 0x1a1   :  { %v1847_v61 = vpop.f32.mrf.mxu0 }
 0x1a2   :  { %v1888_v62 = vpop.f32.mrf.mxu1  ;;  %v1887_v33 = vadd.f32 %v1886_v60, %v1846_v22 }
 0x1a3   :  { %v1848_v63 = vpop.f32.mrf.mxu0 }
 0x1a4   :  { %v1889_v0 = vpop.f32.mrf.mxu1 }
 0x1dd   :  { %v1925_v29 = vpop.f32.mrf.mxu0 }
 0x1de   :  { %v1966_v32 = vpop.f32.mrf.mxu1  ;;  %v1926_v34 = vadd.f32 %v1925_v29, %v1885_v23 }
 0x1df   :  { %v1927_v47 = vpop.f32.mrf.mxu0 }
 0x1e0   :  { %v1968_v6 = vpop.f32.mrf.mxu1  ;;  %v1967_v7 = vadd.f32 %v1966_v32, %v1926_v34  ;;  %v1928_v51 = vadd.f32 %v1927_v47, %v1887_v33 }
 0x1e1   :  { %v1929_v35 = vpop.f32.mrf.mxu0 }
 0x1e2   :  { %v1970_v16 = vpop.f32.mrf.mxu1  ;;  %vm1975_vm2 = vcmp.gt.f32.partialorder %v1967_v7, 0.0  ;;  %v1979_v38 = vmul.f32 0.2, %v1967_v7  ;;  %v1969_v17 = vadd.f32 %v1968_v6, %v1928_v51 }
 0x1e3   :  { %v1930_v39 = vpop.f32.mrf.mxu0 }
 0x1e4   :  { %v1971_v40 = vpop.f32.mrf.mxu1  ;;  %vm1976_vm3 = vcmp.gt.f32.partialorder %v1969_v17, 0.0  ;;  %v1980_v25 = vmul.f32 0.2, %v1969_v17  ;;  %v1983_v36 = vsel %vm1975_vm2, %v1967_v7, %v1979_v38 }
 0x1e5   :  { %v1987_v42 = vpack.c.bf16 %v1983_v36, %v1983_v36 }
 0x1e6   :  { %v1984_v37 = vsel %vm1976_vm3, %v1969_v17, %v1980_v25 }
 0x1e7   :  { %v1988_v41 = vpack.c.bf16 %v1984_v37, %v1984_v37 }
 0x1e9   :  { %2458 = vmatprep.mubr.bf16.mxu1 %v1988_v41 }
 0x1ea   :  { %2459 = vmatmul.mubr.bf16.vlgmr.msra.gmra.mxu1 %v1987_v42 }
 0x22a   :  { %v2419_v44 = vpop.f32.mrf.mxu0 }
 0x22b   :  { %v2420_v53 = vadd.f32 %v2419_v44, %v2058_v50 }
 0x22c   :  { %v2421_v45 = vpop.f32.mrf.mxu0 }
 0x22d   :  { %v2422_v55 = vadd.f32 %v2421_v45, %v2062_v52 }
 0x22e   :  { %v2423_v46 = vpop.f32.mrf.mxu0 }
 0x230   :  { %v2424_v48 = vpop.f32.mrf.mxu0 }
 0x2aa   :  { %v2460_v54 = vpop.f32.mrf.mxu1 }
 0x2ab   :  { %v2461_v56 = vadd.f32 %v2460_v54, %v2420_v53 }
 0x2ac   :  { %v2462_v57 = vpop.f32.mrf.mxu1 }
 0x2ad   :  { %vm2467_vm4 = vcmp.gt.f32.partialorder %v2461_v56, 0.0  ;;  %v2469_v58 = vmul.f32 0.2, %v2461_v56  ;;  %v2463_v59 = vadd.f32 %v2462_v57, %v2422_v55 }
 0x2ae   :  { %v2464_v60 = vpop.f32.mrf.mxu1 }
 0x2af   :  { %vm2468_vm5 = vcmp.gt.f32.partialorder %v2463_v59, 0.0  ;;  %v2470_v61 = vmul.f32 0.2, %v2463_v59  ;;  %v2471_v62 = vsel %vm2467_vm4, %v2461_v56, %v2469_v58 }
 0x2b0   :  { %v2465_v63 = vpop.f32.mrf.mxu1  ;;  %v2473_v2 = vpack.c.bf16 %v2471_v62, %v2471_v62 }
 0x2b1   :  { %v2472_v0 = vsel %vm2468_vm5, %v2463_v59, %v2470_v61 }
 0x2b2   :  { %v2474_v1 = vpack.c.bf16 %v2472_v0, %v2472_v0 }
 0x2b4   :  { %2642 = vmatprep.mubr.bf16.mxu0 %v2474_v1 }
 0x2b5   :  { %2643 = vmatmul.mubr.bf16.vlgmr.msra.gmra.mxu0 %v2473_v2 }
 0x375   :  { %v3025_v19 = vpop.f32.mrf.mxu0 }
 0x377   :  { %v3026_v26 = vpop.f32.mrf.mxu0 }
 0x378   :  { %v3027_v3 = vadd.f32 %v3026_v26, %v3025_v19 }
 0x379   :  { %v3028_v4 = vpop.f32.mrf.mxu0 }
 0x37a   :  { %v2645_v5 = vadd.f32 %v3027_v3, %v2991_v24 }
 0x37b   :  { %v3029_v8 = vpop.f32.mrf.mxu0 }
 0x37c   :  { %v3008_v9 = vmul.f32 -1.442695, %v2645_v5 }
 0x37e   :  { %3541 = vpow2.f32 %v3008_v9 }
 0x38b   :  { %v3542_v10 = vpop.eup %3541 }
 0x38c   :  { %v2653_v11 = vadd.f32 1.0, %v3542_v10 }
 0x38e   :  { %3543 = vrcp.f32 %v2653_v11 }
 0x39b   :  { %v3544_v12 = vpop.eup %3543 }
 0x39c   :  { %2656 = vst [vmem:[%s3796_s7] sm:$0xff] %v3544_v12 }
 0x39d   :  { %2661 = vsyncpa [#allocation3], 1 }
 0x39e   :  { %2662 = vsyncpa [#allocation5], 1 }

</bundles_post_ra>
